<compile_context>
chip_gen: v6e
topology: v6e:2x2x1
jax: 0.10.0
libtpu: 0.0.40
codegen_flags: <defaults>
</compile_context>

<pallas_src>
import functools

import jax
import jax.numpy as jnp
from jax import lax
from jax.experimental import pallas as pl
from jax.experimental.pallas import tpu as pltpu


_EPS = 2.220446049250313e-16     # sys.float_info.epsilon (feature_normalize)
FOLD = 8                         # pixels folded onto the sublane axis
_CONV_TN_TARGET = 2048           # target conv output lane-tile


# ----------------------------------------------------------------------------
# Small helpers
# ----------------------------------------------------------------------------
def _round_up(x, m):
    return (x + m - 1) // m * m


def _pad_lanes(x, n_pad):
    n = x.shape[-1]
    if n_pad == n:
        return x
    return jnp.pad(x, [(0, 0)] * (x.ndim - 1) + [(0, n_pad - n)])


def _pick_tile(n_pad, cap=2048):
    for t in (2048, 1024, 512, 256, 128):
        if t <= cap and n_pad % t == 0:
            return t
    return 128


@functools.lru_cache(maxsize=None)
def _vmem_limit_bytes():
    # Generation-aware VMEM limit: leave ~16 MiB headroom under the physical
    # per-TensorCore capacity; conservative 64 MiB (v7x) fallback if the query
    # is unavailable.
    cap = 64 * 1024 * 1024
    try:
        cap = int(getattr(pltpu.get_tpu_info(), "vmem_capacity_bytes", cap))
    except Exception:
        pass
    return int(max(32 * 1024 * 1024, min(cap - 16 * 1024 * 1024,
                                         112 * 1024 * 1024)))


def _run_lanes(kernel, out_channels, n, *inputs):
    """Lane-tiled launcher: all inputs/outputs are (C_i, n) channel-major."""
    n_pad = _round_up(n, 128)
    tn = _pick_tile(n_pad)
    ins = [_pad_lanes(x.astype(jnp.float32), n_pad) for x in inputs]
    out_shape = tuple(jax.ShapeDtypeStruct((c, n_pad), jnp.float32)
                      for c in out_channels)
    outs = pl.pallas_call(
        kernel,
        grid=(n_pad // tn,),
        out_shape=out_shape,
        in_specs=[pl.BlockSpec((x.shape[0], tn), lambda j: (0, j)) for x in ins],
        out_specs=tuple(pl.BlockSpec((c, tn), lambda j: (0, j))
                        for c in out_channels),
        compiler_params=pltpu.CompilerParams(
            dimension_semantics=("parallel",),
            vmem_limit_bytes=_vmem_limit_bytes()),
    )(*ins)
    return tuple(o[:, :n] for o in outs)


# ----------------------------------------------------------------------------
# Colour-space math (skimage rgb2lab / lab2rgb semantics, D65 white point).
# Operates on (FOLD, tn) per-channel blocks inside the fused kernels.
# ----------------------------------------------------------------------------
_XN, _YN, _ZN = 0.95047, 1.0, 1.08883


def _pow(x, p):
    # max() guard keeps log finite; for negative inputs the other jnp.where
    # branch is the one actually selected, so the clamp is harmless.
    return jnp.exp(p * jnp.log(jnp.maximum(x, 1e-12)))


def _srgb_to_linear(c):
    return jnp.where(c > 0.04045, _pow((c + 0.055) / 1.055, 2.4), c / 12.92)


def _linear_to_srgb(c):
    return jnp.where(c > 0.0031308, 1.055 * _pow(c, 1.0 / 2.4) - 0.055, 12.92 * c)


def _lab_f(t):
    return jnp.where(t > 0.008856, _pow(t, 1.0 / 3.0), 7.787 * t + 16.0 / 116.0)


def _lab_finv(f):
    f3 = f * f * f
    return jnp.where(f3 > 0.008856, f3, (f - 16.0 / 116.0) / 7.787)


def _rgb2lab_rows(r, g, b):                   # each (FOLD, tn)
    r = _srgb_to_linear(r)
    g = _srgb_to_linear(g)
    b = _srgb_to_linear(b)
    x = (0.412453 * r + 0.357580 * g + 0.180423 * b) / _XN
    y = (0.212671 * r + 0.715160 * g + 0.072169 * b) / _YN
    z = (0.019334 * r + 0.119193 * g + 0.950227 * b) / _ZN
    fx, fy, fz = _lab_f(x), _lab_f(y), _lab_f(z)
    return 116.0 * fy - 16.0, 500.0 * (fx - fy), 200.0 * (fy - fz)


def _lab2rgb_rows(L, a, b):                   # each (FOLD, tn), clipped [0,1]
    fy = (L + 16.0) / 116.0
    fx = fy + a / 500.0
    fz = fy - b / 200.0
    x = _XN * _lab_finv(fx)
    y = _YN * _lab_finv(fy)
    z = _ZN * _lab_finv(fz)
    r = 3.2404542 * x - 1.5371385 * y - 0.4985314 * z
    g = -0.9692660 * x + 1.8760108 * y + 0.0415560 * z
    bl = 0.0556434 * x - 0.2040259 * y + 1.0572252 * z
    return (jnp.clip(_linear_to_srgb(r), 0.0, 1.0),
            jnp.clip(_linear_to_srgb(g), 0.0, 1.0),
            jnp.clip(_linear_to_srgb(bl), 0.0, 1.0))


# ----------------------------------------------------------------------------
# Fused colour-front kernel (8-pixel sublane fold):
#   rgb2lab(A), rgb2lab(FAKE), mask blend, reference lab2rgb — one launch.
# Blocks: noise (8, tn); rgb / lab arrays (24, tn) = 3 channels x 8 folded rows.
# ----------------------------------------------------------------------------
def _color_front_kernel(noise_ref, rgba_ref, rgbf_ref,
                        laba_ref, labd_ref, refrgb_ref, *, thresh):
    F = FOLD
    mask = (noise_ref[...] >= thresh).astype(jnp.float32)           # (F, tn)
    ra = rgba_ref[...]
    rf = rgbf_ref[...]
    La, Aa, Ba = _rgb2lab_rows(ra[0:F], ra[F:2 * F], ra[2 * F:3 * F])
    Lf, Af, Bf = _rgb2lab_rows(rf[0:F], rf[F:2 * F], rf[2 * F:3 * F])
    inv = 1.0 - mask
    Ld = La * inv + Lf * mask
    Ad = Aa * inv + Af * mask
    Bd = Ba * inv + Bf * mask
    laba_ref[...] = jnp.concatenate([La, Aa, Ba], axis=0)
    labd_ref[...] = jnp.concatenate([Ld, Ad, Bd], axis=0)
    # Img_Ref = lab2rgb(concat(L_of_A, AB_of_distortion))
    rr, rg, rb = _lab2rgb_rows(La, Ad, Bd)
    refrgb_ref[...] = jnp.concatenate([rr, rg, rb], axis=0)


# Fused clamp(-100,100) on AB + lab2rgb + clip for the coarse image.
def _coarse_rgb_kernel(l_ref, ab_ref, o_ref):
    F = FOLD
    L = l_ref[...]                                                   # (F, tn)
    ab = jnp.clip(ab_ref[...], -100.0, 100.0)                        # (2F, tn)
    rr, rg, rb = _lab2rgb_rows(L, ab[0:F], ab[F:2 * F])
    o_ref[...] = jnp.concatenate([rr, rg, rb], axis=0)


# ----------------------------------------------------------------------------
# GEMM kernel (WarpNet projection): bf16 MXU inputs, f32 accumulate, fused
# bias + ReLU + (optional) per-column L2 normalisation (feature_normalize).
# ----------------------------------------------------------------------------
def _gemm_kernel(a_ref, b_ref, bias_ref, o_ref, *, relu, l2norm):
    acc = jnp.dot(a_ref[...], b_ref[...], preferred_element_type=jnp.float32)
    acc = acc + bias_ref[...]
    if relu:
        acc = jnp.maximum(acc, 0.0)
    if l2norm:
        norm = jnp.sqrt(jnp.sum(acc * acc, axis=0, keepdims=True))
        acc = acc * pl.reciprocal(norm + _EPS, approx=True)
    o_ref[...] = acc


def pallas_gemm(a, b, bias=None, relu=False, l2norm=False, keep_pad=False):
    """(M,K) @ (K,N) + bias [+ relu] [+ column L2-norm]; N lane-tiled."""
    M, K = a.shape
    _, N = b.shape
    n_pad = _round_up(N, 128)
    tn = _pick_tile(n_pad, cap=2048)
    a16 = a.astype(jnp.bfloat16)
    b16 = _pad_lanes(b.astype(jnp.float32), n_pad).astype(jnp.bfloat16)
    if bias is None:
        bias = jnp.zeros((M,), jnp.float32)
    bias = bias.reshape(M, 1).astype(jnp.float32)
    out = pl.pallas_call(
        functools.partial(_gemm_kernel, relu=relu, l2norm=l2norm),
        grid=(n_pad // tn,),
        out_shape=jax.ShapeDtypeStruct((M, n_pad), jnp.float32),
        in_specs=[pl.BlockSpec((M, K), lambda j: (0, 0)),
                  pl.BlockSpec((K, tn), lambda j: (0, j)),
                  pl.BlockSpec((M, 1), lambda j: (0, 0))],
        out_specs=pl.BlockSpec((M, tn), lambda j: (0, j)),
        compiler_params=pltpu.CompilerParams(
            dimension_semantics=("parallel",),
            vmem_limit_bytes=_vmem_limit_bytes()),
    )(a16, b16, bias)
    return out if keep_pad else out[:, :N]


# ----------------------------------------------------------------------------
# WarpNet non-local hot path — flash-attention-style tiled online softmax.
# Channel-major: q/k (C, tile) bf16, v (8, tile) f32, output (8, tq) f32.
# q and k are two halves of the SAME lane-padded projection array (different
# index maps) — no JAX-level slice/re-pad between the GEMM and the warp.
# ----------------------------------------------------------------------------
def _warp_kernel(q_ref, k_ref, v_ref, o_ref, m_ref, l_ref, acc_ref,
                 *, inv_temp, nk_valid, tk):
    ki = pl.program_id(1)

    @pl.when(ki == 0)
    def _():
        m_ref[...] = jnp.full_like(m_ref, -jnp.inf)
        l_ref[...] = jnp.zeros_like(l_ref)
        acc_ref[...] = jnp.zeros_like(acc_ref)

    # sim: (tk, tq) = K^T Q, contraction over the channel axis (f32 accumulate).
    sim = lax.dot_general(k_ref[...], q_ref[...],
                          dimension_numbers=(((0,), (0,)), ((), ())),
                          preferred_element_type=jnp.float32) * inv_temp
    key_idx = ki * tk + lax.broadcasted_iota(jnp.int32, (tk, 1), 0)
    sim = jnp.where(key_idx < nk_valid, sim, -1e30)       # mask padded keys

    m_prev = m_ref[...]                                    # (1, tq)
    m_new = jnp.maximum(m_prev, jnp.max(sim, axis=0, keepdims=True))
    alpha = jnp.exp(m_prev - m_new)
    p = jnp.exp(sim - m_new)                               # (tk, tq) f32
    l_ref[...] = alpha * l_ref[...] + jnp.sum(p, axis=0, keepdims=True)
    # V kept in f32 (Lab values up to ~±128) for colour accuracy.
    pv = lax.dot_general(v_ref[...], p,
                         dimension_numbers=(((1,), (0,)), ((), ())),
                         preferred_element_type=jnp.float32)   # (8, tq)
    acc_ref[...] = alpha * acc_ref[...] + pv
    m_ref[...] = m_new

    @pl.when(ki == pl.num_programs(1) - 1)
    def _():
        o_ref[...] = acc_ref[...] * pl.reciprocal(l_ref[...], approx=True)


def pallas_warp(proj, v, *, nqp, nkp, nk_valid, tq, tk, temperature):
    """proj: (C, nqp+nkp) with A (queries) in [0,nqp) and B (keys) in [nqp,...).
    v: (8, nkp).  Returns warped colours (8, nqp)."""
    C = proj.shape[0]
    cv = v.shape[0]
    kb_off = nqp // tk                     # lane-block offset of the B half
    p16 = proj.astype(jnp.bfloat16)
    out = pl.pallas_call(
        functools.partial(_warp_kernel, inv_temp=1.0 / temperature,
                          nk_valid=nk_valid, tk=tk),
        grid=(nqp // tq, nkp // tk),
        out_shape=jax.ShapeDtypeStruct((cv, nqp), jnp.float32),
        in_specs=[pl.BlockSpec((C, tq), lambda qi, ki: (0, qi)),
                  pl.BlockSpec((C, tk), lambda qi, ki: (0, kb_off + ki)),
                  pl.BlockSpec((cv, tk), lambda qi, ki: (0, ki))],
        out_specs=pl.BlockSpec((cv, tq), lambda qi, ki: (0, qi)),
        scratch_shapes=[pltpu.VMEM((1, tq), jnp.float32),
                        pltpu.VMEM((1, tq), jnp.float32),
                        pltpu.VMEM((cv, tq), jnp.float32)],
        compiler_params=pltpu.CompilerParams(
            dimension_semantics=("parallel", "arbitrary"),
            vmem_limit_bytes=_vmem_limit_bytes()),
    )(p16, p16, v.astype(jnp.float32))
    return out


# ----------------------------------------------------------------------------
# Convolution — lane-tiled, taps folded into the MXU contraction dim.
# The (2*pad)-padded activation is flattened channel-major; each grid step
# reads an aligned (Cin, tn) tile plus a small aligned (Cin, halo) halo tile,
# builds the (Cin*k2, tn) stacked operand from static lane slices and does a
# single matmul.  Optional second output = channel-L2-normalised copy.
# ----------------------------------------------------------------------------
def _conv_kernel(xm_ref, xh_ref, w_ref, b_ref, *out_refs,
                 lane_offs, relu, l2norm_out):
    o_ref = out_refs[0]
    tn = o_ref.shape[1]
    xwin = jnp.concatenate([xm_ref[...], xh_ref[...]], axis=1)   # (Cin, tn+halo)
    cols = jnp.concatenate([xwin[:, off:off + tn] for off in lane_offs], axis=0)
    acc = jnp.dot(w_ref[...], cols, preferred_element_type=jnp.float32)
    acc = acc + b_ref[...]
    if relu:
        acc = jnp.maximum(acc, 0.0)
    o_ref[...] = acc
    if l2norm_out:
        norm = jnp.sqrt(jnp.sum(acc * acc, axis=0, keepdims=True))
        out_refs[1][...] = acc * pl.reciprocal(norm + _EPS, approx=True)


def conv2d_batched(x, w, b, *, relu=True, l2norm_out=False):
    """x: (B, Cin, H, W); w: (Cout, Cin, kh, kw); 'same' padding, stride 1."""
    B, Cin, H, W = x.shape
    Cout, _, kh, kw = w.shape
    cin8 = _round_up(Cin, 8)
    if cin8 != Cin:                # 8-aligned sublane stacking inside the kernel
        x = jnp.pad(x, ((0, 0), (0, cin8 - Cin), (0, 0), (0, 0)))
        w = jnp.pad(w, ((0, 0), (0, cin8 - Cin), (0, 0), (0, 0)))
        Cin = cin8
    ph, pw = kh // 2, kw // 2
    Hp2, Wp2 = H + 4 * ph, W + 4 * pw
    Lb = Hp2 * Wp2
    n_lanes = B * Lb
    # 2*pad border so every tap read of a kept output stays inside the image's
    # own zero-padded block; garbage at border positions is cropped afterwards.
    xp = jnp.pad(x, ((0, 0), (0, 0), (2 * ph, 2 * ph), (2 * pw, 2 * pw)))
    xf = jnp.transpose(xp, (1, 0, 2, 3)).reshape(Cin, n_lanes)
    max_off = 2 * ph * Wp2 + 2 * pw
    halo = max(128, _round_up(max_off, 128))
    k_tiles = max(1, min(_CONV_TN_TARGET // halo, pl.cdiv(n_lanes, halo)))
    tn = halo * k_tiles                     # halo divides tn
    n_out_pad = _round_up(n_lanes, tn)
    n_in = n_out_pad + tn                   # last tile's window stays in-bounds
    xf = _pad_lanes(xf, n_in).astype(jnp.bfloat16)
    lane_offs = tuple(di * Wp2 + dj for di in range(kh) for dj in range(kw))
    w2 = jnp.transpose(w, (0, 2, 3, 1)).reshape(Cout, kh * kw * Cin)
    w2 = w2.astype(jnp.bfloat16)
    bias = b.reshape(Cout, 1).astype(jnp.float32)
    hb = tn // halo
    n_tiles = n_out_pad // tn

    n_outs = 2 if l2norm_out else 1
    out_shape = tuple(jax.ShapeDtypeStruct((Cout, n_out_pad), jnp.float32)
                      for _ in range(n_outs))
    out_specs = tuple(pl.BlockSpec((Cout, tn), lambda j: (0, j))
                      for _ in range(n_outs))
    outs = pl.pallas_call(
        functools.partial(_conv_kernel, lane_offs=lane_offs, relu=relu,
                          l2norm_out=l2norm_out),
        grid=(n_tiles,),
        out_shape=out_shape,
        in_specs=[pl.BlockSpec((Cin, tn), lambda j: (0, j)),
                  pl.BlockSpec((Cin, halo), lambda j: (0, (j + 1) * hb)),
                  pl.BlockSpec((Cout, kh * kw * Cin), lambda j: (0, 0)),
                  pl.BlockSpec((Cout, 1), lambda j: (0, 0))],
        out_specs=out_specs,
        compiler_params=pltpu.CompilerParams(
            dimension_semantics=("parallel",),
            vmem_limit_bytes=_vmem_limit_bytes()),
    )(xf, xf, w2, bias)

    def crop(y):
        y = y[:, :n_lanes].reshape(Cout, B, Hp2, Wp2)[:, :, ph:ph + H, pw:pw + W]
        return jnp.transpose(y, (1, 0, 2, 3))            # (B, Cout, H, W)

    if l2norm_out:
        return crop(outs[0]), crop(outs[1])
    return crop(outs[0])


def conv2d(x_chw, w, b, *, relu=True):
    return conv2d_batched(x_chw[None], w, b, relu=relu)[0]


def avg_pool2(x):                     # (C, H, W)
    C, H, W = x.shape
    return x.reshape(C, H // 2, 2, W // 2, 2).mean(axis=(2, 4))


def avg_pool2_b(x):                   # (B, C, H, W)
    B, C, H, W = x.shape
    return x.reshape(B, C, H // 2, 2, W // 2, 2).mean(axis=(3, 5))


def upsample_nearest(x, factor):      # (C, H, W)
    return jnp.repeat(jnp.repeat(x, factor, axis=1), factor, axis=2)


def upsample_nearest_b(x, factor):    # (B, C, H, W)
    return jnp.repeat(jnp.repeat(x, factor, axis=2), factor, axis=3)


# ----------------------------------------------------------------------------
# Deterministic parameter init (replaces torch.load of .pth checkpoints).
# ----------------------------------------------------------------------------
def init_conv(key, cout, cin, k):
    kw, kb = jax.random.split(key)
    scale = float((cin * k * k) ** -0.5)
    w = jax.random.normal(kw, (cout, cin, k, k), jnp.float32) * scale
    b = jax.random.normal(kb, (cout,), jnp.float32) * 0.01
    return w, b


def init_vgg(key):
    # Reduced VGG19 feature extractor: one conv+ReLU per r12..r52 level.
    chans = [(3, 8), (8, 16), (16, 32), (32, 32), (32, 32)]
    keys = jax.random.split(key, len(chans))
    return [init_conv(k, co, ci, 3) for k, (ci, co) in zip(keys, chans)]


def init_warpnet(key, feat_channels, proj_dim=64):
    ctot = sum(feat_channels[1:])          # levels r22..r52
    kw, _ = jax.random.split(key)
    w = jax.random.normal(kw, (proj_dim, ctot), jnp.float32) * float(ctot ** -0.5)
    b = jnp.zeros((proj_dim,), jnp.float32)
    return w, b


def init_unet(key):
    ks = jax.random.split(key, 5)
    return {
        "inc1": init_conv(ks[0], 16, 3, 3),
        "inc2": init_conv(ks[1], 16, 16, 3),
        "down1": init_conv(ks[2], 32, 16, 3),
        "up1": init_conv(ks[3], 16, 48, 3),
        "outc": init_conv(ks[4], 3, 16, 1),   # mirrors randn((3,64,1,1)) re-init
    }


def init_colorization(key):
    kv, kw, ku = jax.random.split(key, 3)
    vgg = init_vgg(kv)
    warp = init_warpnet(kw, [p[0].shape[0] for p in vgg], proj_dim=64)
    unet_p = init_unet(ku)
    return {"vgg": vgg, "warp": warp, "unet": unet_p}


# ----------------------------------------------------------------------------
# Sub-modules (reduced but structurally faithful).
# ----------------------------------------------------------------------------
_IMNET_MEAN = jnp.array([0.485, 0.456, 0.406], jnp.float32).reshape(3, 1, 1)
_IMNET_STD = jnp.array([0.229, 0.224, 0.225], jnp.float32).reshape(3, 1, 1)


def gray2rgb_batch(l_chw):
    # TODO(synk): original gray2rgb_batch normalization constants unavailable;
    # replicate L/100 into 3 channels.
    g = l_chw / 100.0
    return jnp.concatenate([g, g, g], axis=0)


def vgg_features(params, x_b3hw, preprocess=True):
    # TODO(synk): VGG19_pytorch preprocess details unavailable; ImageNet norm used.
    h = (x_b3hw - _IMNET_MEAN[None]) / _IMNET_STD[None] if preprocess else x_b3hw
    feats_norm = []
    for i, (w, b) in enumerate(params):
        if i > 0:
            h = avg_pool2_b(h)
        if i == 0:
            h = conv2d_batched(h, w, b, relu=True)
        else:
            # feature_normalize fused into the conv epilogue as a 2nd output;
            # the raw feature still feeds the next VGG level.
            h, hn = conv2d_batched(h, w, b, relu=True, l2norm_out=True)
            feats_norm.append(hn)
    return feats_norm  # normalized [r22, r32, r42, r52], each (B, C, h, w)


def warpnet_forward(warp_params, IB_lab, feats_n, temperature=0.01):
    # Non-local warp at H/4 x W/4 resolution, upsampled x4 (as in WarpNet).
    _, H, W = IB_lab.shape
    hq, wq = H // 4, W // 4
    nq = hq * wq
    t = min(512, _round_up(nq, 128))        # query tile == key tile
    nqp = _round_up(nq, t)
    nkp = nqp

    def resize(f):                          # (2, C, h, w) -> (2, C, hq, wq)
        _, C, h, _ = f.shape
        if h > hq:
            fct = h // hq
            f = f.reshape(2, C, hq, fct, wq, fct).mean(axis=(3, 5))
        elif h < hq:
            f = upsample_nearest_b(f, hq // h)
        return f

    gathered = jnp.concatenate([resize(f) for f in feats_n], axis=1)  # (2,Ctot,hq,wq)
    Ctot = gathered.shape[1]
    # A (queries) then B (keys), each half lane-padded to the warp tile size, so
    # the projection output can flow into the warp kernel without re-padding.
    A_cols = _pad_lanes(gathered[0].reshape(Ctot, nq), nqp)
    B_cols = _pad_lanes(gathered[1].reshape(Ctot, nq), nkp)
    AB = jnp.concatenate([A_cols, B_cols], axis=1)           # (Ctot, nqp+nkp)
    w, b = warp_params
    proj = pallas_gemm(w, AB, b, relu=True, l2norm=True, keep_pad=True)

    B_lab_down = avg_pool2(avg_pool2(IB_lab)).reshape(3, nq)            # (3, Nk)
    v = _pad_lanes(jnp.pad(B_lab_down, ((0, FOLD - 3), (0, 0))), nkp)   # (8, nkp)
    warped = pallas_warp(proj, v, nqp=nqp, nkp=nkp, nk_valid=nq,
                         tq=t, tk=t, temperature=temperature)           # (8, nqp)
    nonlocal_BA_lab = upsample_nearest(warped[:3, :nq].reshape(3, hq, wq), 4)
    similarity_map = None   # unused downstream
    return nonlocal_BA_lab[None], similarity_map


def warp_color(vgg_params, warp_params, IA_l, IB_lab, temperature=0.01):
    IA_rgb_from_gray = gray2rgb_batch(IA_l)                    # (3, H, W)
    # Batch the A and B VGG passes through every conv launch.
    x = jnp.stack([IA_rgb_from_gray, IB_lab], axis=0)          # (2, 3, H, W)
    feats_n = vgg_features(vgg_params, x, preprocess=True)     # r22..r52 (normed)
    nonlocal_BA_lab, _ = warpnet_forward(warp_params, IB_lab, feats_n,
                                         temperature=temperature)
    return nonlocal_BA_lab


def unet_forward(params, x_3hw):
    h1 = conv2d(x_3hw, *params["inc1"], relu=True)
    h1 = conv2d(h1, *params["inc2"], relu=True)
    h2 = conv2d(avg_pool2(h1), *params["down1"], relu=True)
    cat = jnp.concatenate([upsample_nearest(h2, 2), h1], axis=0)
    h3 = conv2d(cat, *params["up1"], relu=True)
    return conv2d(h3, *params["outc"], relu=False)


# ----------------------------------------------------------------------------
# Colorization.forward
# ----------------------------------------------------------------------------
def colorization_forward(params, imgs_input, mask_key):
    Img_RGB = imgs_input["img_RGB"]          # (B, H, W, 3) in [0, 1]
    Img_FAKE_RGB = imgs_input["img_FAKE"]
    H, W = Img_RGB.shape[1:3]
    N = H * W
    n8 = -(-N // FOLD)
    Npad8 = n8 * FOLD

    def fold8(x_cn):                          # (C, N) -> (C*FOLD, n8)
        C = x_cn.shape[0]
        xp = jnp.pad(x_cn, ((0, 0), (0, Npad8 - N)))
        return xp.reshape(C, FOLD, n8).reshape(C * FOLD, n8)

    def unfold8(x, C):                        # (C*FOLD, n8) -> (C, N)
        return x.reshape(C, Npad8)[:, :N]

    rgb_a = Img_RGB[0].reshape(N, 3).T.astype(jnp.float32)          # (3, N)
    rgb_f = Img_FAKE_RGB[0].reshape(N, 3).T.astype(jnp.float32)
    # Mask = randn(shape of Img_L); >= 0.2 -> 1, < 0.2 -> 0; blended in-kernel.
    noise = jax.random.normal(mask_key, (FOLD, n8), jnp.float32)

    laba_f, labd_f, refrgb_f = _run_lanes(
        functools.partial(_color_front_kernel, thresh=0.2),
        (3 * FOLD, 3 * FOLD, 3 * FOLD), n8, noise, fold8(rgb_a), fold8(rgb_f))

    lab_a = unfold8(laba_f, 3)                                       # (3, N)
    lab_d = unfold8(labd_f, 3)
    Img_L = lab_a[0:1].reshape(1, H, W)
    Img_Distortion_LAB = lab_d.reshape(3, H, W)
    Img_Ref_RGB = unfold8(refrgb_f, 3).reshape(3, H, W).transpose(1, 2, 0)
    # TODO(synk): the cv2.erode "distortion" in the source is commented out there too.

    Img_Coarse_LAB = warp_color(params["vgg"], params["warp"],
                                Img_L, Img_Distortion_LAB, temperature=0.01)
    # Img_Coarse_L clamp is computed and discarded in the reference; skipped.
    coarse_ab = Img_Coarse_LAB[0, 1:3].reshape(2, N)

    coarse_rgb_f, = _run_lanes(_coarse_rgb_kernel, (3 * FOLD,), n8,
                               laba_f[0:FOLD], fold8(coarse_ab))
    Img_Coarse_RGB_chw = unfold8(coarse_rgb_f, 3).reshape(3, H, W)
    Img_Coarse_RGB = Img_Coarse_RGB_chw.transpose(1, 2, 0)           # (H, W, 3)

    fine = unet_forward(params["unet"], Img_Coarse_RGB_chw)
    Img_Fine_RGB = jnp.transpose(fine[None], (0, 2, 3, 1))           # (1, H, W, 3)

    return {
        "Img_Fine_RGB": Img_Fine_RGB,
        "Img_RGB": Img_RGB,
        "Img_FAKE_RGB": Img_FAKE_RGB,
        "Img_L": Img_L,
        "Img_Ref": Img_Ref_RGB,
        "Img_Coarse_RGB": Img_Coarse_RGB,
        "VGG19": params["vgg"],
    }


if __name__ == "__main__":
    key = jax.random.PRNGKey(0)
    k_params, k_rgb, k_fake, k_mask = jax.random.split(key, 4)
    params = init_colorization(k_params)

    H = W = 16
    imgs_input = {
        "img_RGB": jax.random.uniform(k_rgb, (2, H, W, 3), jnp.float32),
        "img_FAKE": jax.random.uniform(k_fake, (2, H, W, 3), jnp.float32),
    }

    out = colorization_forward(params, imgs_input, k_mask)
    jax.block_until_ready(out)
    assert out["Img_Fine_RGB"].shape == (1, H, W, 3)
    assert out["Img_Coarse_RGB"].shape == (H, W, 3)
    assert out["Img_L"].shape == (1, H, W)
    print("KERNEL_OK")
</pallas_src>

<mosaic_0001>
module attributes {stable_mosaic.version = 11 : i64} {
  func.func @_color_front_kernel(%arg0: i32, %arg1: memref<8x128xf32, #tpu.memory_space<vmem>>, %arg2: memref<24x128xf32, #tpu.memory_space<vmem>>, %arg3: memref<24x128xf32, #tpu.memory_space<vmem>>, %arg4: memref<24x128xf32, #tpu.memory_space<vmem>>, %arg5: memref<24x128xf32, #tpu.memory_space<vmem>>, %arg6: memref<24x128xf32, #tpu.memory_space<vmem>>) attributes {dimension_semantics = [#tpu.dimension_semantics<parallel>], iteration_bounds = array<i64: 1>, scalar_prefetch = 0 : i64, scratch_operands = 0 : i64, tpu.core_type = #tpu.core_type<tc>, window_params = [{transform_indices = @transform_0, window_bounds = array<i64: 8, 128>}, {transform_indices = @transform_1, window_bounds = array<i64: 24, 128>}, {transform_indices = @transform_2, window_bounds = array<i64: 24, 128>}, {transform_indices = @transform_3, window_bounds = array<i64: 24, 128>}, {transform_indices = @transform_4, window_bounds = array<i64: 24, 128>}, {transform_indices = @transform_5, window_bounds = array<i64: 24, 128>}]} {
    %c0 = arith.constant 0 : index
    %c0_0 = arith.constant 0 : index
    %0 = vector.load %arg1[%c0, %c0_0] : memref<8x128xf32, #tpu.memory_space<vmem>>, vector<8x128xf32>
    %cst = arith.constant 2.000000e-01 : f32
    %1 = vector.broadcast %cst : f32 to vector<8x128xf32>
    %2 = arith.cmpf oge, %0, %1 : vector<8x128xf32>
    %3 = arith.extui %2 : vector<8x128xi1> to vector<8x128xi32>
    %4 = arith.sitofp %3 : vector<8x128xi32> to vector<8x128xf32>
    %c0_1 = arith.constant 0 : index
    %c0_2 = arith.constant 0 : index
    %5 = vector.load %arg2[%c0_1, %c0_2] : memref<24x128xf32, #tpu.memory_space<vmem>>, vector<24x128xf32>
    %c0_3 = arith.constant 0 : index
    %c0_4 = arith.constant 0 : index
    %6 = vector.load %arg3[%c0_3, %c0_4] : memref<24x128xf32, #tpu.memory_space<vmem>>, vector<24x128xf32>
    %7 = vector.extract_strided_slice %5 {offsets = [0, 0], sizes = [8, 128], strides = [1, 1]} : vector<24x128xf32> to vector<8x128xf32>
    %8 = vector.extract_strided_slice %5 {offsets = [8, 0], sizes = [8, 128], strides = [1, 1]} : vector<24x128xf32> to vector<8x128xf32>
    %9 = vector.extract_strided_slice %5 {offsets = [16, 0], sizes = [8, 128], strides = [1, 1]} : vector<24x128xf32> to vector<8x128xf32>
    %cst_5 = arith.constant 4.045000e-02 : f32
    %10 = vector.broadcast %cst_5 : f32 to vector<8x128xf32>
    %11 = arith.cmpf ogt, %7, %10 : vector<8x128xf32>
    %cst_6 = arith.constant 5.500000e-02 : f32
    %12 = vector.broadcast %cst_6 : f32 to vector<8x128xf32>
    %13 = arith.addf %7, %12 : vector<8x128xf32>
    %cst_7 = arith.constant 1.055000e+00 : f32
    %14 = vector.broadcast %cst_7 : f32 to vector<8x128xf32>
    %15 = arith.divf %13, %14 : vector<8x128xf32>
    %cst_8 = arith.constant 9.99999996E-13 : f32
    %16 = vector.broadcast %cst_8 : f32 to vector<8x128xf32>
    %17 = arith.maximumf %15, %16 : vector<8x128xf32>
    %18 = math.log %17 : vector<8x128xf32>
    %cst_9 = arith.constant 2.400000e+00 : f32
    %19 = vector.broadcast %cst_9 : f32 to vector<8x128xf32>
    %20 = arith.mulf %19, %18 : vector<8x128xf32>
    %21 = math.exp %20 : vector<8x128xf32>
    %cst_10 = arith.constant 1.292000e+01 : f32
    %22 = vector.broadcast %cst_10 : f32 to vector<8x128xf32>
    %23 = arith.divf %7, %22 : vector<8x128xf32>
    %24 = arith.select %11, %21, %23 : vector<8x128xi1>, vector<8x128xf32>
    %cst_11 = arith.constant 4.045000e-02 : f32
    %25 = vector.broadcast %cst_11 : f32 to vector<8x128xf32>
    %26 = arith.cmpf ogt, %8, %25 : vector<8x128xf32>
    %cst_12 = arith.constant 5.500000e-02 : f32
    %27 = vector.broadcast %cst_12 : f32 to vector<8x128xf32>
    %28 = arith.addf %8, %27 : vector<8x128xf32>
    %cst_13 = arith.constant 1.055000e+00 : f32
    %29 = vector.broadcast %cst_13 : f32 to vector<8x128xf32>
    %30 = arith.divf %28, %29 : vector<8x128xf32>
    %cst_14 = arith.constant 9.99999996E-13 : f32
    %31 = vector.broadcast %cst_14 : f32 to vector<8x128xf32>
    %32 = arith.maximumf %30, %31 : vector<8x128xf32>
    %33 = math.log %32 : vector<8x128xf32>
    %cst_15 = arith.constant 2.400000e+00 : f32
    %34 = vector.broadcast %cst_15 : f32 to vector<8x128xf32>
    %35 = arith.mulf %34, %33 : vector<8x128xf32>
    %36 = math.exp %35 : vector<8x128xf32>
    %cst_16 = arith.constant 1.292000e+01 : f32
    %37 = vector.broadcast %cst_16 : f32 to vector<8x128xf32>
    %38 = arith.divf %8, %37 : vector<8x128xf32>
    %39 = arith.select %26, %36, %38 : vector<8x128xi1>, vector<8x128xf32>
    %cst_17 = arith.constant 4.045000e-02 : f32
    %40 = vector.broadcast %cst_17 : f32 to vector<8x128xf32>
    %41 = arith.cmpf ogt, %9, %40 : vector<8x128xf32>
    %cst_18 = arith.constant 5.500000e-02 : f32
    %42 = vector.broadcast %cst_18 : f32 to vector<8x128xf32>
    %43 = arith.addf %9, %42 : vector<8x128xf32>
    %cst_19 = arith.constant 1.055000e+00 : f32
    %44 = vector.broadcast %cst_19 : f32 to vector<8x128xf32>
    %45 = arith.divf %43, %44 : vector<8x128xf32>
    %cst_20 = arith.constant 9.99999996E-13 : f32
    %46 = vector.broadcast %cst_20 : f32 to vector<8x128xf32>
    %47 = arith.maximumf %45, %46 : vector<8x128xf32>
    %48 = math.log %47 : vector<8x128xf32>
    %cst_21 = arith.constant 2.400000e+00 : f32
    %49 = vector.broadcast %cst_21 : f32 to vector<8x128xf32>
    %50 = arith.mulf %49, %48 : vector<8x128xf32>
    %51 = math.exp %50 : vector<8x128xf32>
    %cst_22 = arith.constant 1.292000e+01 : f32
    %52 = vector.broadcast %cst_22 : f32 to vector<8x128xf32>
    %53 = arith.divf %9, %52 : vector<8x128xf32>
    %54 = arith.select %41, %51, %53 : vector<8x128xi1>, vector<8x128xf32>
    %cst_23 = arith.constant 4.124530e-01 : f32
    %55 = vector.broadcast %cst_23 : f32 to vector<8x128xf32>
    %56 = arith.mulf %55, %24 : vector<8x128xf32>
    %cst_24 = arith.constant 3.575800e-01 : f32
    %57 = vector.broadcast %cst_24 : f32 to vector<8x128xf32>
    %58 = arith.mulf %57, %39 : vector<8x128xf32>
    %59 = arith.addf %56, %58 : vector<8x128xf32>
    %cst_25 = arith.constant 1.804230e-01 : f32
    %60 = vector.broadcast %cst_25 : f32 to vector<8x128xf32>
    %61 = arith.mulf %60, %54 : vector<8x128xf32>
    %62 = arith.addf %59, %61 : vector<8x128xf32>
    %cst_26 = arith.constant 0.95046997 : f32
    %63 = vector.broadcast %cst_26 : f32 to vector<8x128xf32>
    %64 = arith.divf %62, %63 : vector<8x128xf32>
    %cst_27 = arith.constant 2.126710e-01 : f32
    %65 = vector.broadcast %cst_27 : f32 to vector<8x128xf32>
    %66 = arith.mulf %65, %24 : vector<8x128xf32>
    %cst_28 = arith.constant 7.151600e-01 : f32
    %67 = vector.broadcast %cst_28 : f32 to vector<8x128xf32>
    %68 = arith.mulf %67, %39 : vector<8x128xf32>
    %69 = arith.addf %66, %68 : vector<8x128xf32>
    %cst_29 = arith.constant 7.216900e-02 : f32
    %70 = vector.broadcast %cst_29 : f32 to vector<8x128xf32>
    %71 = arith.mulf %70, %54 : vector<8x128xf32>
    %72 = arith.addf %69, %71 : vector<8x128xf32>
    %cst_30 = arith.constant 1.000000e+00 : f32
    %73 = vector.broadcast %cst_30 : f32 to vector<8x128xf32>
    %74 = arith.divf %72, %73 : vector<8x128xf32>
    %cst_31 = arith.constant 1.933400e-02 : f32
    %75 = vector.broadcast %cst_31 : f32 to vector<8x128xf32>
    %76 = arith.mulf %75, %24 : vector<8x128xf32>
    %cst_32 = arith.constant 1.191930e-01 : f32
    %77 = vector.broadcast %cst_32 : f32 to vector<8x128xf32>
    %78 = arith.mulf %77, %39 : vector<8x128xf32>
    %79 = arith.addf %76, %78 : vector<8x128xf32>
    %cst_33 = arith.constant 9.502270e-01 : f32
    %80 = vector.broadcast %cst_33 : f32 to vector<8x128xf32>
    %81 = arith.mulf %80, %54 : vector<8x128xf32>
    %82 = arith.addf %79, %81 : vector<8x128xf32>
    %cst_34 = arith.constant 1.088830e+00 : f32
    %83 = vector.broadcast %cst_34 : f32 to vector<8x128xf32>
    %84 = arith.divf %82, %83 : vector<8x128xf32>
    %cst_35 = arith.constant 8.856000e-03 : f32
    %85 = vector.broadcast %cst_35 : f32 to vector<8x128xf32>
    %86 = arith.cmpf ogt, %64, %85 : vector<8x128xf32>
    %cst_36 = arith.constant 9.99999996E-13 : f32
    %87 = vector.broadcast %cst_36 : f32 to vector<8x128xf32>
    %88 = arith.maximumf %64, %87 : vector<8x128xf32>
    %89 = math.log %88 : vector<8x128xf32>
    %cst_37 = arith.constant 0.333333343 : f32
    %90 = vector.broadcast %cst_37 : f32 to vector<8x128xf32>
    %91 = arith.mulf %90, %89 : vector<8x128xf32>
    %92 = math.exp %91 : vector<8x128xf32>
    %cst_38 = arith.constant 7.787000e+00 : f32
    %93 = vector.broadcast %cst_38 : f32 to vector<8x128xf32>
    %94 = arith.mulf %93, %64 : vector<8x128xf32>
    %cst_39 = arith.constant 0.137931034 : f32
    %95 = vector.broadcast %cst_39 : f32 to vector<8x128xf32>
    %96 = arith.addf %94, %95 : vector<8x128xf32>
    %97 = arith.select %86, %92, %96 : vector<8x128xi1>, vector<8x128xf32>
    %cst_40 = arith.constant 8.856000e-03 : f32
    %98 = vector.broadcast %cst_40 : f32 to vector<8x128xf32>
    %99 = arith.cmpf ogt, %74, %98 : vector<8x128xf32>
    %cst_41 = arith.constant 9.99999996E-13 : f32
    %100 = vector.broadcast %cst_41 : f32 to vector<8x128xf32>
    %101 = arith.maximumf %74, %100 : vector<8x128xf32>
    %102 = math.log %101 : vector<8x128xf32>
    %cst_42 = arith.constant 0.333333343 : f32
    %103 = vector.broadcast %cst_42 : f32 to vector<8x128xf32>
    %104 = arith.mulf %103, %102 : vector<8x128xf32>
    %105 = math.exp %104 : vector<8x128xf32>
    %cst_43 = arith.constant 7.787000e+00 : f32
    %106 = vector.broadcast %cst_43 : f32 to vector<8x128xf32>
    %107 = arith.mulf %106, %74 : vector<8x128xf32>
    %cst_44 = arith.constant 0.137931034 : f32
    %108 = vector.broadcast %cst_44 : f32 to vector<8x128xf32>
    %109 = arith.addf %107, %108 : vector<8x128xf32>
    %110 = arith.select %99, %105, %109 : vector<8x128xi1>, vector<8x128xf32>
    %cst_45 = arith.constant 8.856000e-03 : f32
    %111 = vector.broadcast %cst_45 : f32 to vector<8x128xf32>
    %112 = arith.cmpf ogt, %84, %111 : vector<8x128xf32>
    %cst_46 = arith.constant 9.99999996E-13 : f32
    %113 = vector.broadcast %cst_46 : f32 to vector<8x128xf32>
    %114 = arith.maximumf %84, %113 : vector<8x128xf32>
    %115 = math.log %114 : vector<8x128xf32>
    %cst_47 = arith.constant 0.333333343 : f32
    %116 = vector.broadcast %cst_47 : f32 to vector<8x128xf32>
    %117 = arith.mulf %116, %115 : vector<8x128xf32>
    %118 = math.exp %117 : vector<8x128xf32>
    %cst_48 = arith.constant 7.787000e+00 : f32
    %119 = vector.broadcast %cst_48 : f32 to vector<8x128xf32>
    %120 = arith.mulf %119, %84 : vector<8x128xf32>
    %cst_49 = arith.constant 0.137931034 : f32
    %121 = vector.broadcast %cst_49 : f32 to vector<8x128xf32>
    %122 = arith.addf %120, %121 : vector<8x128xf32>
    %123 = arith.select %112, %118, %122 : vector<8x128xi1>, vector<8x128xf32>
    %cst_50 = arith.constant 1.160000e+02 : f32
    %124 = vector.broadcast %cst_50 : f32 to vector<8x128xf32>
    %125 = arith.mulf %124, %110 : vector<8x128xf32>
    %cst_51 = arith.constant 1.600000e+01 : f32
    %126 = vector.broadcast %cst_51 : f32 to vector<8x128xf32>
    %127 = arith.subf %125, %126 : vector<8x128xf32>
    %128 = arith.subf %97, %110 : vector<8x128xf32>
    %cst_52 = arith.constant 5.000000e+02 : f32
    %129 = vector.broadcast %cst_52 : f32 to vector<8x128xf32>
    %130 = arith.mulf %129, %128 : vector<8x128xf32>
    %131 = arith.subf %110, %123 : vector<8x128xf32>
    %cst_53 = arith.constant 2.000000e+02 : f32
    %132 = vector.broadcast %cst_53 : f32 to vector<8x128xf32>
    %133 = arith.mulf %132, %131 : vector<8x128xf32>
    %134 = vector.extract_strided_slice %6 {offsets = [0, 0], sizes = [8, 128], strides = [1, 1]} : vector<24x128xf32> to vector<8x128xf32>
    %135 = vector.extract_strided_slice %6 {offsets = [8, 0], sizes = [8, 128], strides = [1, 1]} : vector<24x128xf32> to vector<8x128xf32>
    %136 = vector.extract_strided_slice %6 {offsets = [16, 0], sizes = [8, 128], strides = [1, 1]} : vector<24x128xf32> to vector<8x128xf32>
    %cst_54 = arith.constant 4.045000e-02 : f32
    %137 = vector.broadcast %cst_54 : f32 to vector<8x128xf32>
    %138 = arith.cmpf ogt, %134, %137 : vector<8x128xf32>
    %cst_55 = arith.constant 5.500000e-02 : f32
    %139 = vector.broadcast %cst_55 : f32 to vector<8x128xf32>
    %140 = arith.addf %134, %139 : vector<8x128xf32>
    %cst_56 = arith.constant 1.055000e+00 : f32
    %141 = vector.broadcast %cst_56 : f32 to vector<8x128xf32>
    %142 = arith.divf %140, %141 : vector<8x128xf32>
    %cst_57 = arith.constant 9.99999996E-13 : f32
    %143 = vector.broadcast %cst_57 : f32 to vector<8x128xf32>
    %144 = arith.maximumf %142, %143 : vector<8x128xf32>
    %145 = math.log %144 : vector<8x128xf32>
    %cst_58 = arith.constant 2.400000e+00 : f32
    %146 = vector.broadcast %cst_58 : f32 to vector<8x128xf32>
    %147 = arith.mulf %146, %145 : vector<8x128xf32>
    %148 = math.exp %147 : vector<8x128xf32>
    %cst_59 = arith.constant 1.292000e+01 : f32
    %149 = vector.broadcast %cst_59 : f32 to vector<8x128xf32>
    %150 = arith.divf %134, %149 : vector<8x128xf32>
    %151 = arith.select %138, %148, %150 : vector<8x128xi1>, vector<8x128xf32>
    %cst_60 = arith.constant 4.045000e-02 : f32
    %152 = vector.broadcast %cst_60 : f32 to vector<8x128xf32>
    %153 = arith.cmpf ogt, %135, %152 : vector<8x128xf32>
    %cst_61 = arith.constant 5.500000e-02 : f32
    %154 = vector.broadcast %cst_61 : f32 to vector<8x128xf32>
    %155 = arith.addf %135, %154 : vector<8x128xf32>
    %cst_62 = arith.constant 1.055000e+00 : f32
    %156 = vector.broadcast %cst_62 : f32 to vector<8x128xf32>
    %157 = arith.divf %155, %156 : vector<8x128xf32>
    %cst_63 = arith.constant 9.99999996E-13 : f32
    %158 = vector.broadcast %cst_63 : f32 to vector<8x128xf32>
    %159 = arith.maximumf %157, %158 : vector<8x128xf32>
    %160 = math.log %159 : vector<8x128xf32>
    %cst_64 = arith.constant 2.400000e+00 : f32
    %161 = vector.broadcast %cst_64 : f32 to vector<8x128xf32>
    %162 = arith.mulf %161, %160 : vector<8x128xf32>
    %163 = math.exp %162 : vector<8x128xf32>
    %cst_65 = arith.constant 1.292000e+01 : f32
    %164 = vector.broadcast %cst_65 : f32 to vector<8x128xf32>
    %165 = arith.divf %135, %164 : vector<8x128xf32>
    %166 = arith.select %153, %163, %165 : vector<8x128xi1>, vector<8x128xf32>
    %cst_66 = arith.constant 4.045000e-02 : f32
    %167 = vector.broadcast %cst_66 : f32 to vector<8x128xf32>
    %168 = arith.cmpf ogt, %136, %167 : vector<8x128xf32>
    %cst_67 = arith.constant 5.500000e-02 : f32
    %169 = vector.broadcast %cst_67 : f32 to vector<8x128xf32>
    %170 = arith.addf %136, %169 : vector<8x128xf32>
    %cst_68 = arith.constant 1.055000e+00 : f32
    %171 = vector.broadcast %cst_68 : f32 to vector<8x128xf32>
    %172 = arith.divf %170, %171 : vector<8x128xf32>
    %cst_69 = arith.constant 9.99999996E-13 : f32
    %173 = vector.broadcast %cst_69 : f32 to vector<8x128xf32>
    %174 = arith.maximumf %172, %173 : vector<8x128xf32>
    %175 = math.log %174 : vector<8x128xf32>
    %cst_70 = arith.constant 2.400000e+00 : f32
    %176 = vector.broadcast %cst_70 : f32 to vector<8x128xf32>
    %177 = arith.mulf %176, %175 : vector<8x128xf32>
    %178 = math.exp %177 : vector<8x128xf32>
    %cst_71 = arith.constant 1.292000e+01 : f32
    %179 = vector.broadcast %cst_71 : f32 to vector<8x128xf32>
    %180 = arith.divf %136, %179 : vector<8x128xf32>
    %181 = arith.select %168, %178, %180 : vector<8x128xi1>, vector<8x128xf32>
    %cst_72 = arith.constant 4.124530e-01 : f32
    %182 = vector.broadcast %cst_72 : f32 to vector<8x128xf32>
    %183 = arith.mulf %182, %151 : vector<8x128xf32>
    %cst_73 = arith.constant 3.575800e-01 : f32
    %184 = vector.broadcast %cst_73 : f32 to vector<8x128xf32>
    %185 = arith.mulf %184, %166 : vector<8x128xf32>
    %186 = arith.addf %183, %185 : vector<8x128xf32>
    %cst_74 = arith.constant 1.804230e-01 : f32
    %187 = vector.broadcast %cst_74 : f32 to vector<8x128xf32>
    %188 = arith.mulf %187, %181 : vector<8x128xf32>
    %189 = arith.addf %186, %188 : vector<8x128xf32>
    %cst_75 = arith.constant 0.95046997 : f32
    %190 = vector.broadcast %cst_75 : f32 to vector<8x128xf32>
    %191 = arith.divf %189, %190 : vector<8x128xf32>
    %cst_76 = arith.constant 2.126710e-01 : f32
    %192 = vector.broadcast %cst_76 : f32 to vector<8x128xf32>
    %193 = arith.mulf %192, %151 : vector<8x128xf32>
    %cst_77 = arith.constant 7.151600e-01 : f32
    %194 = vector.broadcast %cst_77 : f32 to vector<8x128xf32>
    %195 = arith.mulf %194, %166 : vector<8x128xf32>
    %196 = arith.addf %193, %195 : vector<8x128xf32>
    %cst_78 = arith.constant 7.216900e-02 : f32
    %197 = vector.broadcast %cst_78 : f32 to vector<8x128xf32>
    %198 = arith.mulf %197, %181 : vector<8x128xf32>
    %199 = arith.addf %196, %198 : vector<8x128xf32>
    %cst_79 = arith.constant 1.000000e+00 : f32
    %200 = vector.broadcast %cst_79 : f32 to vector<8x128xf32>
    %201 = arith.divf %199, %200 : vector<8x128xf32>
    %cst_80 = arith.constant 1.933400e-02 : f32
    %202 = vector.broadcast %cst_80 : f32 to vector<8x128xf32>
    %203 = arith.mulf %202, %151 : vector<8x128xf32>
    %cst_81 = arith.constant 1.191930e-01 : f32
    %204 = vector.broadcast %cst_81 : f32 to vector<8x128xf32>
    %205 = arith.mulf %204, %166 : vector<8x128xf32>
    %206 = arith.addf %203, %205 : vector<8x128xf32>
    %cst_82 = arith.constant 9.502270e-01 : f32
    %207 = vector.broadcast %cst_82 : f32 to vector<8x128xf32>
    %208 = arith.mulf %207, %181 : vector<8x128xf32>
    %209 = arith.addf %206, %208 : vector<8x128xf32>
    %cst_83 = arith.constant 1.088830e+00 : f32
    %210 = vector.broadcast %cst_83 : f32 to vector<8x128xf32>
    %211 = arith.divf %209, %210 : vector<8x128xf32>
    %cst_84 = arith.constant 8.856000e-03 : f32
    %212 = vector.broadcast %cst_84 : f32 to vector<8x128xf32>
    %213 = arith.cmpf ogt, %191, %212 : vector<8x128xf32>
    %cst_85 = arith.constant 9.99999996E-13 : f32
    %214 = vector.broadcast %cst_85 : f32 to vector<8x128xf32>
    %215 = arith.maximumf %191, %214 : vector<8x128xf32>
    %216 = math.log %215 : vector<8x128xf32>
    %cst_86 = arith.constant 0.333333343 : f32
    %217 = vector.broadcast %cst_86 : f32 to vector<8x128xf32>
    %218 = arith.mulf %217, %216 : vector<8x128xf32>
    %219 = math.exp %218 : vector<8x128xf32>
    %cst_87 = arith.constant 7.787000e+00 : f32
    %220 = vector.broadcast %cst_87 : f32 to vector<8x128xf32>
    %221 = arith.mulf %220, %191 : vector<8x128xf32>
    %cst_88 = arith.constant 0.137931034 : f32
    %222 = vector.broadcast %cst_88 : f32 to vector<8x128xf32>
    %223 = arith.addf %221, %222 : vector<8x128xf32>
    %224 = arith.select %213, %219, %223 : vector<8x128xi1>, vector<8x128xf32>
    %cst_89 = arith.constant 8.856000e-03 : f32
    %225 = vector.broadcast %cst_89 : f32 to vector<8x128xf32>
    %226 = arith.cmpf ogt, %201, %225 : vector<8x128xf32>
    %cst_90 = arith.constant 9.99999996E-13 : f32
    %227 = vector.broadcast %cst_90 : f32 to vector<8x128xf32>
    %228 = arith.maximumf %201, %227 : vector<8x128xf32>
    %229 = math.log %228 : vector<8x128xf32>
    %cst_91 = arith.constant 0.333333343 : f32
    %230 = vector.broadcast %cst_91 : f32 to vector<8x128xf32>
    %231 = arith.mulf %230, %229 : vector<8x128xf32>
    %232 = math.exp %231 : vector<8x128xf32>
    %cst_92 = arith.constant 7.787000e+00 : f32
    %233 = vector.broadcast %cst_92 : f32 to vector<8x128xf32>
    %234 = arith.mulf %233, %201 : vector<8x128xf32>
    %cst_93 = arith.constant 0.137931034 : f32
    %235 = vector.broadcast %cst_93 : f32 to vector<8x128xf32>
    %236 = arith.addf %234, %235 : vector<8x128xf32>
    %237 = arith.select %226, %232, %236 : vector<8x128xi1>, vector<8x128xf32>
    %cst_94 = arith.constant 8.856000e-03 : f32
    %238 = vector.broadcast %cst_94 : f32 to vector<8x128xf32>
    %239 = arith.cmpf ogt, %211, %238 : vector<8x128xf32>
    %cst_95 = arith.constant 9.99999996E-13 : f32
    %240 = vector.broadcast %cst_95 : f32 to vector<8x128xf32>
    %241 = arith.maximumf %211, %240 : vector<8x128xf32>
    %242 = math.log %241 : vector<8x128xf32>
    %cst_96 = arith.constant 0.333333343 : f32
    %243 = vector.broadcast %cst_96 : f32 to vector<8x128xf32>
    %244 = arith.mulf %243, %242 : vector<8x128xf32>
    %245 = math.exp %244 : vector<8x128xf32>
    %cst_97 = arith.constant 7.787000e+00 : f32
    %246 = vector.broadcast %cst_97 : f32 to vector<8x128xf32>
    %247 = arith.mulf %246, %211 : vector<8x128xf32>
    %cst_98 = arith.constant 0.137931034 : f32
    %248 = vector.broadcast %cst_98 : f32 to vector<8x128xf32>
    %249 = arith.addf %247, %248 : vector<8x128xf32>
    %250 = arith.select %239, %245, %249 : vector<8x128xi1>, vector<8x128xf32>
    %cst_99 = arith.constant 1.160000e+02 : f32
    %251 = vector.broadcast %cst_99 : f32 to vector<8x128xf32>
    %252 = arith.mulf %251, %237 : vector<8x128xf32>
    %cst_100 = arith.constant 1.600000e+01 : f32
    %253 = vector.broadcast %cst_100 : f32 to vector<8x128xf32>
    %254 = arith.subf %252, %253 : vector<8x128xf32>
    %255 = arith.subf %224, %237 : vector<8x128xf32>
    %cst_101 = arith.constant 5.000000e+02 : f32
    %256 = vector.broadcast %cst_101 : f32 to vector<8x128xf32>
    %257 = arith.mulf %256, %255 : vector<8x128xf32>
    %258 = arith.subf %237, %250 : vector<8x128xf32>
    %cst_102 = arith.constant 2.000000e+02 : f32
    %259 = vector.broadcast %cst_102 : f32 to vector<8x128xf32>
    %260 = arith.mulf %259, %258 : vector<8x128xf32>
    %cst_103 = arith.constant 1.000000e+00 : f32
    %261 = vector.broadcast %cst_103 : f32 to vector<8x128xf32>
    %262 = arith.subf %261, %4 : vector<8x128xf32>
    %263 = arith.mulf %127, %262 : vector<8x128xf32>
    %264 = arith.mulf %254, %4 : vector<8x128xf32>
    %265 = arith.addf %263, %264 : vector<8x128xf32>
    %266 = arith.mulf %130, %262 : vector<8x128xf32>
    %267 = arith.mulf %257, %4 : vector<8x128xf32>
    %268 = arith.addf %266, %267 : vector<8x128xf32>
    %269 = arith.mulf %133, %262 : vector<8x128xf32>
    %270 = arith.mulf %260, %4 : vector<8x128xf32>
    %271 = arith.addf %269, %270 : vector<8x128xf32>
    %272 = tpu.concatenate %127, %130, %133 in 0 : vector<8x128xf32>, vector<8x128xf32>, vector<8x128xf32> -> vector<24x128xf32>
    %c0_104 = arith.constant 0 : index
    %c0_105 = arith.constant 0 : index
    %273 = vector.load %arg4[%c0_104, %c0_105] : memref<24x128xf32, #tpu.memory_space<vmem>>, vector<24x128xf32>
    tpu.vector_store %arg4[%c0_104, %c0_105], %272 {strides = array<i32>} : memref<24x128xf32, #tpu.memory_space<vmem>>, vector<24x128xf32>,
    %274 = tpu.concatenate %265, %268, %271 in 0 : vector<8x128xf32>, vector<8x128xf32>, vector<8x128xf32> -> vector<24x128xf32>
    %c0_106 = arith.constant 0 : index
    %c0_107 = arith.constant 0 : index
    %275 = vector.load %arg5[%c0_106, %c0_107] : memref<24x128xf32, #tpu.memory_space<vmem>>, vector<24x128xf32>
    tpu.vector_store %arg5[%c0_106, %c0_107], %274 {strides = array<i32>} : memref<24x128xf32, #tpu.memory_space<vmem>>, vector<24x128xf32>,
    %cst_108 = arith.constant 1.600000e+01 : f32
    %276 = vector.broadcast %cst_108 : f32 to vector<8x128xf32>
    %277 = arith.addf %127, %276 : vector<8x128xf32>
    %cst_109 = arith.constant 1.160000e+02 : f32
    %278 = vector.broadcast %cst_109 : f32 to vector<8x128xf32>
    %279 = arith.divf %277, %278 : vector<8x128xf32>
    %cst_110 = arith.constant 5.000000e+02 : f32
    %280 = vector.broadcast %cst_110 : f32 to vector<8x128xf32>
    %281 = arith.divf %268, %280 : vector<8x128xf32>
    %282 = arith.addf %279, %281 : vector<8x128xf32>
    %cst_111 = arith.constant 2.000000e+02 : f32
    %283 = vector.broadcast %cst_111 : f32 to vector<8x128xf32>
    %284 = arith.divf %271, %283 : vector<8x128xf32>
    %285 = arith.subf %279, %284 : vector<8x128xf32>
    %286 = arith.mulf %282, %282 : vector<8x128xf32>
    %287 = arith.mulf %286, %282 : vector<8x128xf32>
    %cst_112 = arith.constant 8.856000e-03 : f32
    %288 = vector.broadcast %cst_112 : f32 to vector<8x128xf32>
    %289 = arith.cmpf ogt, %287, %288 : vector<8x128xf32>
    %cst_113 = arith.constant 0.137931034 : f32
    %290 = vector.broadcast %cst_113 : f32 to vector<8x128xf32>
    %291 = arith.subf %282, %290 : vector<8x128xf32>
    %cst_114 = arith.constant 7.787000e+00 : f32
    %292 = vector.broadcast %cst_114 : f32 to vector<8x128xf32>
    %293 = arith.divf %291, %292 : vector<8x128xf32>
    %294 = arith.select %289, %287, %293 : vector<8x128xi1>, vector<8x128xf32>
    %cst_115 = arith.constant 0.95046997 : f32
    %295 = vector.broadcast %cst_115 : f32 to vector<8x128xf32>
    %296 = arith.mulf %295, %294 : vector<8x128xf32>
    %297 = arith.mulf %279, %279 : vector<8x128xf32>
    %298 = arith.mulf %297, %279 : vector<8x128xf32>
    %cst_116 = arith.constant 8.856000e-03 : f32
    %299 = vector.broadcast %cst_116 : f32 to vector<8x128xf32>
    %300 = arith.cmpf ogt, %298, %299 : vector<8x128xf32>
    %cst_117 = arith.constant 0.137931034 : f32
    %301 = vector.broadcast %cst_117 : f32 to vector<8x128xf32>
    %302 = arith.subf %279, %301 : vector<8x128xf32>
    %cst_118 = arith.constant 7.787000e+00 : f32
    %303 = vector.broadcast %cst_118 : f32 to vector<8x128xf32>
    %304 = arith.divf %302, %303 : vector<8x128xf32>
    %305 = arith.select %300, %298, %304 : vector<8x128xi1>, vector<8x128xf32>
    %cst_119 = arith.constant 1.000000e+00 : f32
    %306 = vector.broadcast %cst_119 : f32 to vector<8x128xf32>
    %307 = arith.mulf %306, %305 : vector<8x128xf32>
    %308 = arith.mulf %285, %285 : vector<8x128xf32>
    %309 = arith.mulf %308, %285 : vector<8x128xf32>
    %cst_120 = arith.constant 8.856000e-03 : f32
    %310 = vector.broadcast %cst_120 : f32 to vector<8x128xf32>
    %311 = arith.cmpf ogt, %309, %310 : vector<8x128xf32>
    %cst_121 = arith.constant 0.137931034 : f32
    %312 = vector.broadcast %cst_121 : f32 to vector<8x128xf32>
    %313 = arith.subf %285, %312 : vector<8x128xf32>
    %cst_122 = arith.constant 7.787000e+00 : f32
    %314 = vector.broadcast %cst_122 : f32 to vector<8x128xf32>
    %315 = arith.divf %313, %314 : vector<8x128xf32>
    %316 = arith.select %311, %309, %315 : vector<8x128xi1>, vector<8x128xf32>
    %cst_123 = arith.constant 1.088830e+00 : f32
    %317 = vector.broadcast %cst_123 : f32 to vector<8x128xf32>
    %318 = arith.mulf %317, %316 : vector<8x128xf32>
    %cst_124 = arith.constant 3.2404542 : f32
    %319 = vector.broadcast %cst_124 : f32 to vector<8x128xf32>
    %320 = arith.mulf %319, %296 : vector<8x128xf32>
    %cst_125 = arith.constant 1.53713846 : f32
    %321 = vector.broadcast %cst_125 : f32 to vector<8x128xf32>
    %322 = arith.mulf %321, %307 : vector<8x128xf32>
    %323 = arith.subf %320, %322 : vector<8x128xf32>
    %cst_126 = arith.constant 0.498531401 : f32
    %324 = vector.broadcast %cst_126 : f32 to vector<8x128xf32>
    %325 = arith.mulf %324, %318 : vector<8x128xf32>
    %326 = arith.subf %323, %325 : vector<8x128xf32>
    %cst_127 = arith.constant -0.969265997 : f32
    %327 = vector.broadcast %cst_127 : f32 to vector<8x128xf32>
    %328 = arith.mulf %327, %296 : vector<8x128xf32>
    %cst_128 = arith.constant 1.87601078 : f32
    %329 = vector.broadcast %cst_128 : f32 to vector<8x128xf32>
    %330 = arith.mulf %329, %307 : vector<8x128xf32>
    %331 = arith.addf %328, %330 : vector<8x128xf32>
    %cst_129 = arith.constant 4.155600e-02 : f32
    %332 = vector.broadcast %cst_129 : f32 to vector<8x128xf32>
    %333 = arith.mulf %332, %318 : vector<8x128xf32>
    %334 = arith.addf %331, %333 : vector<8x128xf32>
    %cst_130 = arith.constant 5.564340e-02 : f32
    %335 = vector.broadcast %cst_130 : f32 to vector<8x128xf32>
    %336 = arith.mulf %335, %296 : vector<8x128xf32>
    %cst_131 = arith.constant 0.204025894 : f32
    %337 = vector.broadcast %cst_131 : f32 to vector<8x128xf32>
    %338 = arith.mulf %337, %307 : vector<8x128xf32>
    %339 = arith.subf %336, %338 : vector<8x128xf32>
    %cst_132 = arith.constant 1.05722523 : f32
    %340 = vector.broadcast %cst_132 : f32 to vector<8x128xf32>
    %341 = arith.mulf %340, %318 : vector<8x128xf32>
    %342 = arith.addf %339, %341 : vector<8x128xf32>
    %cst_133 = arith.constant 3.130800e-03 : f32
    %343 = vector.broadcast %cst_133 : f32 to vector<8x128xf32>
    %344 = arith.cmpf ogt, %326, %343 : vector<8x128xf32>
    %cst_134 = arith.constant 9.99999996E-13 : f32
    %345 = vector.broadcast %cst_134 : f32 to vector<8x128xf32>
    %346 = arith.maximumf %326, %345 : vector<8x128xf32>
    %347 = math.log %346 : vector<8x128xf32>
    %cst_135 = arith.constant 0.416666657 : f32
    %348 = vector.broadcast %cst_135 : f32 to vector<8x128xf32>
    %349 = arith.mulf %348, %347 : vector<8x128xf32>
    %350 = math.exp %349 : vector<8x128xf32>
    %cst_136 = arith.constant 1.055000e+00 : f32
    %351 = vector.broadcast %cst_136 : f32 to vector<8x128xf32>
    %352 = arith.mulf %351, %350 : vector<8x128xf32>
    %cst_137 = arith.constant 5.500000e-02 : f32
    %353 = vector.broadcast %cst_137 : f32 to vector<8x128xf32>
    %354 = arith.subf %352, %353 : vector<8x128xf32>
    %cst_138 = arith.constant 1.292000e+01 : f32
    %355 = vector.broadcast %cst_138 : f32 to vector<8x128xf32>
    %356 = arith.mulf %355, %326 : vector<8x128xf32>
    %357 = arith.select %344, %354, %356 : vector<8x128xi1>, vector<8x128xf32>
    %cst_139 = arith.constant 0.000000e+00 : f32
    %cst_140 = arith.constant 1.000000e+00 : f32
    %358 = vector.broadcast %cst_139 : f32 to vector<8x128xf32>
    %359 = arith.maximumf %358, %357 : vector<8x128xf32>
    %360 = vector.broadcast %cst_140 : f32 to vector<8x128xf32>
    %361 = arith.minimumf %360, %359 : vector<8x128xf32>
    %cst_141 = arith.constant 3.130800e-03 : f32
    %362 = vector.broadcast %cst_141 : f32 to vector<8x128xf32>
    %363 = arith.cmpf ogt, %334, %362 : vector<8x128xf32>
    %cst_142 = arith.constant 9.99999996E-13 : f32
    %364 = vector.broadcast %cst_142 : f32 to vector<8x128xf32>
    %365 = arith.maximumf %334, %364 : vector<8x128xf32>
    %366 = math.log %365 : vector<8x128xf32>
    %cst_143 = arith.constant 0.416666657 : f32
    %367 = vector.broadcast %cst_143 : f32 to vector<8x128xf32>
    %368 = arith.mulf %367, %366 : vector<8x128xf32>
    %369 = math.exp %368 : vector<8x128xf32>
    %cst_144 = arith.constant 1.055000e+00 : f32
    %370 = vector.broadcast %cst_144 : f32 to vector<8x128xf32>
    %371 = arith.mulf %370, %369 : vector<8x128xf32>
    %cst_145 = arith.constant 5.500000e-02 : f32
    %372 = vector.broadcast %cst_145 : f32 to vector<8x128xf32>
    %373 = arith.subf %371, %372 : vector<8x128xf32>
    %cst_146 = arith.constant 1.292000e+01 : f32
    %374 = vector.broadcast %cst_146 : f32 to vector<8x128xf32>
    %375 = arith.mulf %374, %334 : vector<8x128xf32>
    %376 = arith.select %363, %373, %375 : vector<8x128xi1>, vector<8x128xf32>
    %cst_147 = arith.constant 0.000000e+00 : f32
    %cst_148 = arith.constant 1.000000e+00 : f32
    %377 = vector.broadcast %cst_147 : f32 to vector<8x128xf32>
    %378 = arith.maximumf %377, %376 : vector<8x128xf32>
    %379 = vector.broadcast %cst_148 : f32 to vector<8x128xf32>
    %380 = arith.minimumf %379, %378 : vector<8x128xf32>
    %cst_149 = arith.constant 3.130800e-03 : f32
    %381 = vector.broadcast %cst_149 : f32 to vector<8x128xf32>
    %382 = arith.cmpf ogt, %342, %381 : vector<8x128xf32>
    %cst_150 = arith.constant 9.99999996E-13 : f32
    %383 = vector.broadcast %cst_150 : f32 to vector<8x128xf32>
    %384 = arith.maximumf %342, %383 : vector<8x128xf32>
    %385 = math.log %384 : vector<8x128xf32>
    %cst_151 = arith.constant 0.416666657 : f32
    %386 = vector.broadcast %cst_151 : f32 to vector<8x128xf32>
    %387 = arith.mulf %386, %385 : vector<8x128xf32>
    %388 = math.exp %387 : vector<8x128xf32>
    %cst_152 = arith.constant 1.055000e+00 : f32
    %389 = vector.broadcast %cst_152 : f32 to vector<8x128xf32>
    %390 = arith.mulf %389, %388 : vector<8x128xf32>
    %cst_153 = arith.constant 5.500000e-02 : f32
    %391 = vector.broadcast %cst_153 : f32 to vector<8x128xf32>
    %392 = arith.subf %390, %391 : vector<8x128xf32>
    %cst_154 = arith.constant 1.292000e+01 : f32
    %393 = vector.broadcast %cst_154 : f32 to vector<8x128xf32>
    %394 = arith.mulf %393, %342 : vector<8x128xf32>
    %395 = arith.select %382, %392, %394 : vector<8x128xi1>, vector<8x128xf32>
    %cst_155 = arith.constant 0.000000e+00 : f32
    %cst_156 = arith.constant 1.000000e+00 : f32
    %396 = vector.broadcast %cst_155 : f32 to vector<8x128xf32>
    %397 = arith.maximumf %396, %395 : vector<8x128xf32>
    %398 = vector.broadcast %cst_156 : f32 to vector<8x128xf32>
    %399 = arith.minimumf %398, %397 : vector<8x128xf32>
    %400 = tpu.concatenate %361, %380, %399 in 0 : vector<8x128xf32>, vector<8x128xf32>, vector<8x128xf32> -> vector<24x128xf32>
    %c0_157 = arith.constant 0 : index
    %c0_158 = arith.constant 0 : index
    %401 = vector.load %arg6[%c0_157, %c0_158] : memref<24x128xf32, #tpu.memory_space<vmem>>, vector<24x128xf32>
    tpu.vector_store %arg6[%c0_157, %c0_158], %400 {strides = array<i32>} : memref<24x128xf32, #tpu.memory_space<vmem>>, vector<24x128xf32>,
    return
  }
  func.func @transform_0(%arg0: i32) -> (i32, i32) {
    %c0_i32 = arith.constant 0 : i32
    %c0_i32_0 = arith.constant 0 : i32
    return %c0_i32, %arg0 : i32, i32
  }
  func.func @transform_1(%arg0: i32) -> (i32, i32) {
    %c0_i32 = arith.constant 0 : i32
    %c0_i32_0 = arith.constant 0 : i32
    return %c0_i32, %arg0 : i32, i32
  }
  func.func @transform_2(%arg0: i32) -> (i32, i32) {
    %c0_i32 = arith.constant 0 : i32
    %c0_i32_0 = arith.constant 0 : i32
    return %c0_i32, %arg0 : i32, i32
  }
  func.func @transform_3(%arg0: i32) -> (i32, i32) {
    %c0_i32 = arith.constant 0 : i32
    %c0_i32_0 = arith.constant 0 : i32
    return %c0_i32, %arg0 : i32, i32
  }
  func.func @transform_4(%arg0: i32) -> (i32, i32) {
    %c0_i32 = arith.constant 0 : i32
    %c0_i32_0 = arith.constant 0 : i32
    return %c0_i32, %arg0 : i32, i32
  }
  func.func @transform_5(%arg0: i32) -> (i32, i32) {
    %c0_i32 = arith.constant 0 : i32
    %c0_i32_0 = arith.constant 0 : i32
    return %c0_i32, %arg0 : i32, i32
  }
}

</mosaic_0001>

<bundles_post_ra>
// kernel: tpu_custom_call.1
= control target key start
LH: loop header
LB: loop body
LE: loop exit
PB: predicated region body
PF: predicated region fallthrough
CT: control target
= control target key end

     0   :  { %11 = vsyncpa [#allocation3], 0  ;;  %s742_s0 = inlined_call_operand.hbm [shape: f32[8,128], index: 0, kind: input, shape index: {}]   ;;  %s743_s1 = inlined_call_operand.hbm [shape: f32[24,128], index: 1, kind: input, shape index: {}]   ;;  %s744_s2 = inlined_call_operand.hbm [shape: f32[24,128], index: 2, kind: input, shape index: {}]   ;;  %s745_s3 = inlined_call_operand.hbm [shape: f32[24,128], index: 3, kind: output, shape index: {0}]   ;;  %s746_s4 = inlined_call_operand.hbm [shape: f32[24,128], index: 4, kind: output, shape index: {1}]   ;;  %s747_s5 = inlined_call_operand.hbm [shape: f32[24,128], index: 5, kind: output, shape index: {2}]  }
   0x1   :  { %12 = vsyncpa [#allocation6], 0 }
   0x2   :  { %13 = vsyncpa [#allocation4], 0 }
   0x3   :  { %14 = vsyncpa [#allocation10], 0  ;;  %s602_s18 = smov [#allocation5]  }
   0x4   :  { %s30_s19 = sshll.u32 %s602_s18, 4  ;;  %s31_s19 = int_to_ptr.vmem [resolvable:$true] %s30_s19 }
   0x5   :  { %s482_s20 = scalar_lea.vmem %s31_s19, 384  ;;  %p487_p1 = scmp.lt.s32.totalorder %s31_s19, %s31_s19 }
   0x6   :  { %p483_p0 = scmp.ne.s32.totalorder %s31_s19, %s482_s20  ;;  %p488_p2 = scmp.lt.s32.totalorder %s482_s20, %s482_s20 }
   0x8   :  { %p489_p3 = por %p488_p2, %p487_p1 }
   0xa   :  { %p490_p4 = pnand %p489_p3, %p483_p0 }
   0xc   :  { %493 = shalt.err (!%p490_p4)
}
   0xd   :  { %s603_s21 = smov 128   ;;  %s604_s22 = smov 8  }
   0xe   :  { %36 = dma.hbm_to_vmem [thread:$0]  %s743_s1, 384, %s31_s19, [#allocation6], %s603_s21, %s603_s21, %s604_s22  }
   0xf   :  { %s605_s25 = smov [#allocation2]   ;;  %s606_s27 = smov [#allocation7]  }
  0x10   :  { %s21_s26 = sshll.u32 %s605_s25, 4  ;;  %s42_s28 = sshll.u32 %s606_s27, 4  ;;  %s22_s26 = int_to_ptr.vmem [resolvable:$true] %s21_s26  ;;  %s43_s28 = int_to_ptr.vmem [resolvable:$true] %s42_s28 }
  0x11   :  { %s502_s29 = scalar_lea.vmem %s22_s26, 128  ;;  %p507_p6 = scmp.lt.s32.totalorder %s22_s26, %s22_s26 }
  0x12   :  { %p503_p5 = scmp.ne.s32.totalorder %s22_s26, %s502_s29  ;;  %p508_p7 = scmp.lt.s32.totalorder %s502_s29, %s502_s29 }
  0x14   :  { %p509_p8 = por %p508_p7, %p507_p6 }
  0x16   :  { %p510_p9 = pnand %p509_p8, %p503_p5 }
  0x18   :  { %513 = shalt.err (!%p510_p9)
}
  0x19   :  { %24 = dma.hbm_to_vmem [thread:$0]  %s742_s0, 128, %s22_s26, [#allocation3]  }
  0x1a   :  { %s522_s7 = scalar_lea.vmem %s43_s28, 384  ;;  %p527_p11 = scmp.lt.s32.totalorder %s43_s28, %s43_s28 }
  0x1b   :  { %p523_p10 = scmp.ne.s32.totalorder %s43_s28, %s522_s7  ;;  %p528_p12 = scmp.lt.s32.totalorder %s522_s7, %s522_s7 }
  0x1d   :  { %p529_p13 = por %p528_p12, %p527_p11 }
  0x1f   :  { %p530_p0 = pnand %p529_p13, %p523_p10 }
  0x21   :  { %533 = shalt.err (!%p530_p0)
}
  0x22   :  { %48 = dma.hbm_to_vmem [thread:$0]  %s744_s2, 384, %s43_s28, [#allocation6], %s603_s21, %s603_s21, %s604_s22  }
  0x23   :  { %594 = dma.done.wait [#allocation3], 128  }
  0x24   :  { %595 = vsyncadd [#allocation3], 4294967168 }
  0x25   :  { %596 = dma.done.wait [#allocation6], 768  }
  0x26   :  { %597 = vsyncadd [#allocation6], 4294966528  ;;  %v656_v0 = vld [vmem:[#allocation5] sm:$0xff]  ;;  %v658_v1 = vld [vmem:[#allocation5 + $0x8] sm:$0xff]  ;;  %s608_s0 = smov [#allocation8]  }
  0x27   :  { %v660_v2 = vld [vmem:[#allocation5 + $0x10] sm:$0xff]  ;;  %v69_v3 = vadd.f32 0.055, %v656_v0  ;;  %v663_v4 = vld [vmem:[#allocation7] sm:$0xff]  ;;  %v82_v5 = vadd.f32 0.055, %v658_v1 }
  0x28   :  { %v666_v7 = vld [vmem:[#allocation7 + $0x8] sm:$0xff]  ;;  %v93_v9 = vadd.f32 0.055, %v660_v2  ;;  %v159_v11 = vadd.f32 0.055, %v663_v4  ;;  %v670_v12 = vld [vmem:[#allocation7 + $0x10] sm:$0xff] }
  0x29   :  { %v71_v6 = vmul.f32 0.94786733, %v69_v3  ;;  %v83_v8 = vmul.f32 0.94786733, %v82_v5  ;;  %v170_v16 = vadd.f32 0.055, %v666_v7 }
  0x2a   :  { %v94_v14 = vmul.f32 0.94786733, %v93_v9  ;;  %v160_v15 = vmul.f32 0.94786733, %v159_v11  ;;  %v181_v20 = vadd.f32 0.055, %v670_v12 }
  0x2b   :  { %v72_v10 = vmax.f32 %v71_v6, 1e-12  ;;  %v84_v13 = vmax.f32 %v83_v8, 1e-12  ;;  %v171_v19 = vmul.f32 0.94786733, %v170_v16 }
  0x2c   :  { %v95_v17 = vmax.f32 %v94_v14, 1e-12  ;;  %v161_v18 = vmax.f32 %v160_v15, 1e-12  ;;  %v182_v22 = vmul.f32 0.94786733, %v181_v20 }
  0x2d   :  { %414 = vlog2.f32 %v72_v10  ;;  %v172_v21 = vmax.f32 %v171_v19, 1e-12  ;;  %v79_v48 = vmul.f32 0.07739938, %v656_v0  ;;  %vm68_vm0 = vcmp.gt.f32.partialorder %v656_v0, 0.04045 }
  0x2e   :  { %416 = vlog2.f32 %v84_v13  ;;  %v183_v23 = vmax.f32 %v182_v22, 1e-12  ;;  %v90_v49 = vmul.f32 0.07739938, %v658_v1  ;;  %vm81_vm1 = vcmp.gt.f32.partialorder %v658_v1, 0.04045 }
  0x2f   :  { %418 = vlog2.f32 %v95_v17  ;;  %vm92_vm2 = vcmp.gt.f32.partialorder %v660_v2, 0.04045  ;;  %v101_v51 = vmul.f32 0.07739938, %v660_v2  ;;  %vm158_vm3 = vcmp.gt.f32.partialorder %v663_v4, 0.04045 }
  0x30   :  { %420 = vlog2.f32 %v161_v18  ;;  %v167_v54 = vmul.f32 0.07739938, %v663_v4  ;;  %v178_v55 = vmul.f32 0.07739938, %v666_v7  ;;  %vm169_vm4 = vcmp.gt.f32.partialorder %v666_v7, 0.04045 }
  0x31   :  { %422 = vlog2.f32 %v172_v21  ;;  %vm180_vm5 = vcmp.gt.f32.partialorder %v670_v12, 0.04045  ;;  %v189_v3 = vmul.f32 0.07739938, %v670_v12  ;;  %s352_s2 = sshll.u32 %s608_s0, 4  ;;  %s353_s2 = int_to_ptr.vmem [resolvable:$true] %s352_s2 }
  0x32   :  { %424 = vlog2.f32 %v183_v23  ;;  %s534_s9 = scalar_lea.vmem %s353_s2, 384  ;;  %p539_p2 = scmp.lt.s32.totalorder %s353_s2, %s353_s2 }
  0x33   :  { %p535_p1 = scmp.ne.s32.totalorder %s353_s2, %s534_s9  ;;  %p540_p3 = scmp.lt.s32.totalorder %s534_s9, %s534_s9 }
  0x35   :  { %p541_p4 = por %p540_p3, %p539_p2 }
  0x37   :  { %p542_p5 = pnand %p541_p4, %p535_p1 }
  0x3a   :  { %v415_v24 = vpop.eup %414 }
  0x3b   :  { %v417_v25 = vpop.eup %416  ;;  %v74_v26 = vmul.f32 0.6931472, %v415_v24 }
  0x3c   :  { %v86_v27 = vmul.f32 0.6931472, %v417_v25  ;;  %v419_v28 = vpop.eup %418 }
  0x3d   :  { %v75_v29 = vmul.f32 2.4, %v74_v26  ;;  %v421_v30 = vpop.eup %420  ;;  %v97_v32 = vmul.f32 0.6931472, %v419_v28 }
  0x3e   :  { %v87_v31 = vmul.f32 2.4, %v86_v27  ;;  %v163_v34 = vmul.f32 0.6931472, %v421_v30  ;;  %v423_v35 = vpop.eup %422 }
  0x3f   :  { %v76_v33 = vmul.f32 1.442695, %v75_v29  ;;  %v98_v37 = vmul.f32 2.4, %v97_v32  ;;  %v174_v39 = vmul.f32 0.6931472, %v423_v35  ;;  %v425_v40 = vpop.eup %424 }
  0x40   :  { %v88_v36 = vmul.f32 1.442695, %v87_v31  ;;  %v164_v38 = vmul.f32 2.4, %v163_v34  ;;  %v185_v44 = vmul.f32 0.6931472, %v425_v40 }
  0x41   :  { %426 = vpow2.f32 %v76_v33  ;;  %v99_v41 = vmul.f32 1.442695, %v98_v37  ;;  %v175_v43 = vmul.f32 2.4, %v174_v39 }
  0x42   :  { %428 = vpow2.f32 %v88_v36  ;;  %v165_v42 = vmul.f32 1.442695, %v164_v38  ;;  %v186_v46 = vmul.f32 2.4, %v185_v44 }
  0x43   :  { %430 = vpow2.f32 %v99_v41  ;;  %v176_v45 = vmul.f32 1.442695, %v175_v43 }
  0x44   :  { %432 = vpow2.f32 %v165_v42  ;;  %v187_v47 = vmul.f32 1.442695, %v186_v46 }
  0x45   :  { %434 = vpow2.f32 %v176_v45 }
  0x46   :  { %436 = vpow2.f32 %v187_v47 }
  0x4e   :  { %v427_v50 = vpop.eup %426 }
  0x4f   :  { %v429_v52 = vpop.eup %428  ;;  %v80_v53 = vsel %vm68_vm0, %v427_v50, %v79_v48 }
  0x50   :  { %v91_v56 = vsel %vm81_vm1, %v429_v52, %v90_v49  ;;  %v110_v57 = vmul.f32 0.212671, %v80_v53  ;;  %v103_v58 = vmul.f32 0.412453, %v80_v53  ;;  %v115_v59 = vmul.f32 0.019334, %v80_v53  ;;  %v431_v60 = vpop.eup %430 }
  0x51   :  { %v111_v61 = vmul.f32 0.71516, %v91_v56  ;;  %v104_v62 = vmul.f32 0.35758, %v91_v56  ;;  %v116_v63 = vmul.f32 0.119193, %v91_v56  ;;  %v433_v0 = vpop.eup %432  ;;  %v102_v1 = vsel %vm92_vm2, %v431_v60, %v101_v51 }
  0x52   :  { %v113_v6 = vmul.f32 0.072169, %v102_v1  ;;  %v168_v8 = vsel %vm158_vm3, %v433_v0, %v167_v54  ;;  %v435_v10 = vpop.eup %434  ;;  %v106_v13 = vmul.f32 0.180423, %v102_v1  ;;  %v118_v17 = vmul.f32 0.950227, %v102_v1 }
  0x53   :  { %v112_v5 = vadd.f32 %v111_v61, %v110_v57  ;;  %v105_v9 = vadd.f32 %v104_v62, %v103_v58  ;;  %v197_v11 = vmul.f32 0.212671, %v168_v8  ;;  %v191_v14 = vmul.f32 0.412453, %v168_v8  ;;  %v437_v7 = vpop.eup %436 }
  0x54   :  { %v179_v2 = vsel %vm169_vm4, %v435_v10, %v178_v55  ;;  %v117_v16 = vadd.f32 %v116_v63, %v115_v59  ;;  %v190_v4 = vsel %vm180_vm5, %v437_v7, %v189_v3  ;;  %v202_v22 = vmul.f32 0.019334, %v168_v8 }
  0x55   :  { %v690_v15 = vadd.f32 %v113_v6, %v112_v5  ;;  %v198_v18 = vmul.f32 0.71516, %v179_v2  ;;  %v107_v19 = vadd.f32 %v106_v13, %v105_v9  ;;  %v192_v20 = vmul.f32 0.35758, %v179_v2  ;;  %v58_v6 = vld [vmem:[#allocation2] sm:$0xff] }
  0x56   :  { %v203_v23 = vmul.f32 0.119193, %v179_v2  ;;  %v200_v25 = vmul.f32 0.072169, %v190_v4  ;;  %v194_v28 = vmul.f32 0.180423, %v190_v4  ;;  %v119_v29 = vadd.f32 %v118_v17, %v117_v16 }
  0x57   :  { %v133_v21 = vmax.f32 %v690_v15, 1e-12  ;;  %v199_v24 = vadd.f32 %v198_v18, %v197_v11  ;;  %v695_v26 = vmul.f32 1.0521111, %v107_v19  ;;  %v193_v27 = vadd.f32 %v192_v20, %v191_v14 }
  0x58   :  { %v700_v33 = vmul.f32 0.91841704, %v119_v29  ;;  %v204_v34 = vadd.f32 %v203_v23, %v202_v22  ;;  %v205_v12 = vmul.f32 0.950227, %v190_v4  ;;  %v139_v63 = vmul.f32 7.787, %v690_v15 }
  0x59   :  { %438 = vlog2.f32 %v133_v21  ;;  %v697_v30 = vadd.f32 %v200_v25, %v199_v24  ;;  %v123_v31 = vmax.f32 %v695_v26, 1e-12  ;;  %v195_v32 = vadd.f32 %v194_v28, %v193_v27 }
  0x5a   :  { %v206_v37 = vadd.f32 %v205_v12, %v204_v34  ;;  %v143_v38 = vmax.f32 %v700_v33, 1e-12  ;;  %v129_v3 = vmul.f32 7.787, %v695_v26  ;;  %v140_v8 = vadd.f32 0.13793103, %v139_v63 }
  0x5b   :  { %v219_v35 = vmax.f32 %v697_v30, 1e-12  ;;  %440 = vlog2.f32 %v123_v31  ;;  %v703_v36 = vmul.f32 1.0521111, %v195_v32  ;;  %vm132_vm6 = vcmp.gt.f32.partialorder %v690_v15, 0.008856 }
  0x5c   :  { %v707_v40 = vmul.f32 0.91841704, %v206_v37  ;;  %v225_v9 = vmul.f32 7.787, %v697_v30  ;;  %vm59_vm7 = vcmp.ge.f32.partialorder %v58_v6, 0.2 }
  0x5d   :  { %442 = vlog2.f32 %v219_v35  ;;  %v209_v39 = vmax.f32 %v703_v36, 1e-12  ;;  %v130_v11 = vadd.f32 0.13793103, %v129_v3  ;;  %v149_v13 = vmul.f32 7.787, %v700_v33 }
  0x5e   :  { %444 = vlog2.f32 %v143_v38  ;;  %v229_v41 = vmax.f32 %v707_v40, 1e-12  ;;  %vm122_vm8 = vcmp.gt.f32.partialorder %v695_v26, 0.008856  ;;  %v215_v2 = vmul.f32 7.787, %v703_v36 }
  0x5f   :  { %446 = vlog2.f32 %v209_v39  ;;  %v226_v17 = vadd.f32 0.13793103, %v225_v9  ;;  %v607_v18 = vmov 0.0   ;;  %vm218_vm9 = vcmp.gt.f32.partialorder %v697_v30, 0.008856 }
  0x60   :  { %448 = vlog2.f32 %v229_v41  ;;  %v396_v19 = vsel %vm59_vm7, 1.0, %v607_v18  ;;  %v150_v21 = vadd.f32 0.13793103, %v149_v13  ;;  %v235_v4 = vmul.f32 7.787, %v707_v40 }
  0x61   :  { %v216_v24 = vadd.f32 0.13793103, %v215_v2  ;;  %vm142_vm10 = vcmp.gt.f32.partialorder %v700_v33, 0.008856  ;;  %vm208_vm11 = vcmp.gt.f32.partialorder %v703_v36, 0.008856 }
  0x62   :  { %v244_v28 = vsub.f32 1.0, %v396_v19  ;;  %vm228_vm12 = vcmp.gt.f32.partialorder %v707_v40, 0.008856  ;;  %v236_v34 = vadd.f32 0.13793103, %v235_v4 }
  0x66   :  { %v439_v42 = vpop.eup %438 }
  0x67   :  { %v135_v43 = vmul.f32 0.6931472, %v439_v42 }
  0x68   :  { %v441_v44 = vpop.eup %440 }
  0x69   :  { %v136_v45 = vmul.f32 0.33333334, %v135_v43  ;;  %v125_v46 = vmul.f32 0.6931472, %v441_v44 }
  0x6a   :  { %v443_v47 = vpop.eup %442 }
  0x6b   :  { %v137_v48 = vmul.f32 1.442695, %v136_v45  ;;  %v221_v49 = vmul.f32 0.6931472, %v443_v47  ;;  %v126_v50 = vmul.f32 0.33333334, %v125_v46  ;;  %v445_v51 = vpop.eup %444 }
  0x6c   :  { %v447_v52 = vpop.eup %446  ;;  %v145_v55 = vmul.f32 0.6931472, %v445_v51 }
  0x6d   :  { %450 = vpow2.f32 %v137_v48  ;;  %v222_v53 = vmul.f32 0.33333334, %v221_v49  ;;  %v127_v54 = vmul.f32 1.442695, %v126_v50  ;;  %v211_v56 = vmul.f32 0.6931472, %v447_v52  ;;  %v449_v59 = vpop.eup %448 }
  0x6e   :  { %v146_v58 = vmul.f32 0.33333334, %v145_v55  ;;  %v231_v62 = vmul.f32 0.6931472, %v449_v59 }
  0x6f   :  { %v223_v57 = vmul.f32 1.442695, %v222_v53  ;;  %452 = vpow2.f32 %v127_v54  ;;  %v212_v60 = vmul.f32 0.33333334, %v211_v56 }
  0x70   :  { %v147_v61 = vmul.f32 1.442695, %v146_v58  ;;  %v232_v1 = vmul.f32 0.33333334, %v231_v62 }
  0x71   :  { %454 = vpow2.f32 %v223_v57  ;;  %v213_v0 = vmul.f32 1.442695, %v212_v60 }
  0x72   :  { %456 = vpow2.f32 %v147_v61  ;;  %v233_v5 = vmul.f32 1.442695, %v232_v1 }
  0x73   :  { %458 = vpow2.f32 %v213_v0 }
  0x74   :  { %460 = vpow2.f32 %v233_v5 }
  0x7a   :  { %v451_v10 = vpop.eup %450 }
  0x7b   :  { %v141_v14 = vsel %vm132_vm6, %v451_v10, %v140_v8 }
  0x7c   :  { %v152_v16 = vmul.f32 116.0, %v141_v14  ;;  %v453_v7 = vpop.eup %452 }
  0x7d   :  { %v131_v20 = vsel %vm122_vm8, %v453_v7, %v130_v11 }
  0x7e   :  { %v397_v15 = vadd.f32 -16.0, %v152_v16  ;;  %v455_v22 = vpop.eup %454  ;;  %v154_v23 = vsub.f32 %v131_v20, %v141_v14 }
  0x7f   :  { %v227_v25 = vsel %vm218_vm9, %v455_v22, %v226_v17  ;;  %v457_v26 = vpop.eup %456 }
  0x80   :  { %254 = vst [vmem:[#allocation8] sm:$0xff] %v397_v15  ;;  %v238_v27 = vmul.f32 116.0, %v227_v25  ;;  %v260_v29 = vadd.f32 16.0, %v397_v15  ;;  %v155_v31 = vmul.f32 500.0, %v154_v23  ;;  %v459_v30 = vpop.eup %458  ;;  %v151_v32 = vsel %vm142_vm10, %v457_v26, %v150_v21 }
  0x81   :  { %v245_v35 = vmul.f32 %v397_v15, %v244_v28  ;;  %v217_v37 = vsel %vm208_vm11, %v459_v30, %v216_v24  ;;  %v156_v33 = vsub.f32 %v141_v14, %v151_v32  ;;  %v461_v39 = vpop.eup %460 }
  0x82   :  { %v398_v12 = vadd.f32 -16.0, %v238_v27  ;;  %255 = vst [vmem:[#allocation8 + $0x8] sm:$0xff] %v155_v31  ;;  %v240_v38 = vsub.f32 %v217_v37, %v227_v25  ;;  %v262_v41 = vmul.f32 0.00862069, %v260_v29  ;;  %v248_v44 = vmul.f32 %v244_v28, %v155_v31 }
  0x83   :  { %v157_v42 = vmul.f32 200.0, %v156_v33  ;;  %v237_v45 = vsel %vm228_vm12, %v461_v39, %v236_v34 }
  0x84   :  { %v246_v36 = vmul.f32 %v398_v12, %v396_v19  ;;  %v241_v43 = vmul.f32 500.0, %v240_v38  ;;  %v242_v47 = vsub.f32 %v227_v25, %v237_v45  ;;  %v277_v48 = vmul.f32 %v262_v41, %v262_v41 }
  0x85   :  { %256 = vst [vmem:[#allocation8 + $0x10] sm:$0xff] %v157_v42 }
  0x86   :  { %v247_v46 = vadd.f32 %v246_v36, %v245_v35  ;;  %v249_v49 = vmul.f32 %v396_v19, %v241_v43 }
  0x87   :  { %545 = shalt.err (!%p542_p5)
}
  0x88   :  { %358 = dma.vmem_to_hbm [thread:$0]  %s353_s2, 384, %s745_s3, [#allocation4], %s603_s21, %s603_s21, %s604_s22   ;;  %257 = vst [vmem:[#allocation9] sm:$0xff] %v247_v46  ;;  %v243_v40 = vmul.f32 200.0, %v242_v47  ;;  %v251_v50 = vmul.f32 %v244_v28, %v157_v42  ;;  %v250_v51 = vadd.f32 %v249_v49, %v248_v44  ;;  %v400_v52 = vadd.f32 -0.13793103, %v262_v41 }
  0x89   :  { %s609_s12 = smov [#allocation9]   ;;  %v278_v54 = vmul.f32 %v277_v48, %v262_v41 }
  0x8a   :  { %s364_s13 = sshll.u32 %s609_s12, 4  ;;  %v252_v53 = vmul.f32 %v396_v19, %v243_v40  ;;  %258 = vst [vmem:[#allocation9 + $0x8] sm:$0xff] %v250_v51  ;;  %v264_v55 = vmul.f32 0.002, %v250_v51  ;;  %v281_v58 = vmul.f32 0.12841916, %v400_v52  ;;  %s365_s13 = int_to_ptr.vmem [resolvable:$true] %s364_s13 }
  0x8b   :  { %vm279_vm13 = vcmp.gt.f32.partialorder %v278_v54, 0.008856  ;;  %s554_s3 = scalar_lea.vmem %s365_s13, 384  ;;  %p559_p7 = scmp.lt.s32.totalorder %s365_s13, %s365_s13 }
  0x8c   :  { %v253_v56 = vadd.f32 %v252_v53, %v251_v50  ;;  %v265_v57 = vadd.f32 %v264_v55, %v262_v41  ;;  %p555_p6 = scmp.ne.s32.totalorder %s365_s13, %s554_s3  ;;  %p560_p8 = scmp.lt.s32.totalorder %s554_s3, %s554_s3 }
  0x8e   :  { %259 = vst [vmem:[#allocation9 + $0x10] sm:$0xff] %v253_v56  ;;  %v267_v59 = vmul.f32 0.005, %v253_v56  ;;  %v269_v60 = vmul.f32 %v265_v57, %v265_v57  ;;  %v399_v61 = vadd.f32 -0.13793103, %v265_v57  ;;  %p561_p9 = por %p560_p8, %p559_p7 }
  0x90   :  { %p562_p10 = pnand %p561_p9, %p555_p6 }
  0x92   :  { %565 = shalt.err (!%p562_p10)
}
  0x93   :  { %370 = dma.vmem_to_hbm [thread:$0]  %s365_s13, 384, %s746_s4, [#allocation10], %s603_s21, %s603_s21, %s604_s22   ;;  %v268_v62 = vsub.f32 %v262_v41, %v267_v59  ;;  %v270_v63 = vmul.f32 %v269_v60, %v265_v57  ;;  %v274_v0 = vmul.f32 0.12841916, %v399_v61  ;;  %v282_v1 = vsel %vm279_vm13, %v278_v54, %v281_v58 }
  0x94   :  { %v291_v10 = vmul.f32 1.5371385, %v282_v1  ;;  %v296_v13 = vmul.f32 1.8760108, %v282_v1  ;;  %v301_v14 = vmul.f32 0.2040259, %v282_v1 }
  0x95   :  { %v283_v3 = vmul.f32 %v268_v62, %v268_v62  ;;  %v401_v5 = vadd.f32 -0.13793103, %v268_v62  ;;  %vm271_vm14 = vcmp.gt.f32.partialorder %v270_v63, 0.008856  ;;  %s610_s4 = smov [#allocation11]  }
  0x96   :  { %v275_v6 = vsel %vm271_vm14, %v270_v63, %v274_v0  ;;  %s376_s16 = sshll.u32 %s610_s4, 4  ;;  %s377_s16 = int_to_ptr.vmem [resolvable:$true] %s376_s16 }
  0x97   :  { %v284_v8 = vmul.f32 %v283_v3, %v268_v62  ;;  %v287_v9 = vmul.f32 0.12841916, %v401_v5  ;;  %v276_v11 = vmul.f32 0.95047, %v275_v6  ;;  %s574_s17 = scalar_lea.vmem %s377_s16, 384  ;;  %p579_p12 = scmp.lt.s32.totalorder %s377_s16, %s377_s16 }
  0x98   :  { %p575_p11 = scmp.ne.s32.totalorder %s377_s16, %s574_s17  ;;  %p580_p13 = scmp.lt.s32.totalorder %s574_s17, %s574_s17 }
  0x99   :  { %vm285_vm15 = vcmp.gt.f32.partialorder %v284_v8, 0.008856  ;;  %v290_v16 = vmul.f32 3.2404542, %v276_v11  ;;  %v295_v17 = vmul.f32 -0.969266, %v276_v11 }
  0x9a   :  { %v288_v2 = vsel %vm285_vm15, %v284_v8, %v287_v9  ;;  %v300_v7 = vmul.f32 0.0556434, %v276_v11  ;;  %p581_p0 = por %p580_p13, %p579_p12 }
  0x9b   :  { %v289_v18 = vmul.f32 1.08883, %v288_v2  ;;  %v292_v19 = vsub.f32 %v290_v16, %v291_v10  ;;  %v297_v15 = vadd.f32 %v296_v13, %v295_v17 }
  0x9c   :  { %v302_v20 = vsub.f32 %v300_v7, %v301_v14  ;;  %p582_p1 = pnand %p581_p0, %p575_p11 }
  0x9d   :  { %v293_v21 = vmul.f32 0.4985314, %v289_v18  ;;  %v298_v4 = vmul.f32 0.041556, %v289_v18  ;;  %v303_v22 = vmul.f32 1.0572252, %v289_v18 }
  0x9f   :  { %v294_v23 = vsub.f32 %v292_v19, %v293_v21  ;;  %v299_v24 = vadd.f32 %v298_v4, %v297_v15  ;;  %v304_v25 = vadd.f32 %v303_v22, %v302_v20 }
  0xa1   :  { %v306_v26 = vmax.f32 %v294_v23, 1e-12  ;;  %v319_v27 = vmax.f32 %v299_v24, 1e-12  ;;  %v332_v28 = vmax.f32 %v304_v25, 1e-12 }
  0xa2   :  { %vm305_vm0 = vcmp.gt.f32.partialorder %v294_v23, 0.0031308  ;;  %v314_v44 = vmul.f32 12.92, %v294_v23  ;;  %vm318_vm1 = vcmp.gt.f32.partialorder %v299_v24, 0.0031308 }
  0xa3   :  { %462 = vlog2.f32 %v306_v26  ;;  %v327_v47 = vmul.f32 12.92, %v299_v24  ;;  %v340_v40 = vmul.f32 12.92, %v304_v25  ;;  %vm331_vm2 = vcmp.gt.f32.partialorder %v304_v25, 0.0031308 }
  0xa4   :  { %464 = vlog2.f32 %v319_v27 }
  0xa5   :  { %466 = vlog2.f32 %v332_v28 }
  0xb0   :  { %v463_v29 = vpop.eup %462 }
  0xb1   :  { %v465_v31 = vpop.eup %464  ;;  %v308_v30 = vmul.f32 0.6931472, %v463_v29 }
  0xb2   :  { %v467_v32 = vpop.eup %466  ;;  %v321_v34 = vmul.f32 0.6931472, %v465_v31 }
  0xb3   :  { %v309_v12 = vmul.f32 0.41666666, %v308_v30  ;;  %v334_v35 = vmul.f32 0.6931472, %v467_v32 }
  0xb4   :  { %v322_v37 = vmul.f32 0.41666666, %v321_v34 }
  0xb5   :  { %v310_v33 = vmul.f32 1.442695, %v309_v12  ;;  %v335_v38 = vmul.f32 0.41666666, %v334_v35 }
  0xb6   :  { %v323_v39 = vmul.f32 1.442695, %v322_v37 }
  0xb7   :  { %468 = vpow2.f32 %v310_v33  ;;  %v336_v36 = vmul.f32 1.442695, %v335_v38 }
  0xb8   :  { %470 = vpow2.f32 %v323_v39 }
  0xb9   :  { %472 = vpow2.f32 %v336_v36 }
  0xc4   :  { %v469_v41 = vpop.eup %468 }
  0xc5   :  { %v471_v42 = vpop.eup %470  ;;  %v312_v43 = vmul.f32 1.055, %v469_v41 }
  0xc6   :  { %v473_v45 = vpop.eup %472  ;;  %v325_v46 = vmul.f32 1.055, %v471_v42 }
  0xc7   :  { %v402_v48 = vadd.f32 -0.055, %v312_v43  ;;  %v338_v49 = vmul.f32 1.055, %v473_v45 }
  0xc8   :  { %v403_v50 = vadd.f32 -0.055, %v325_v46 }
  0xc9   :  { %v315_v51 = vsel %vm305_vm0, %v402_v48, %v314_v44  ;;  %v404_v52 = vadd.f32 -0.055, %v338_v49 }
  0xca   :  { %v316_v53 = vmax.f32 %v315_v51, 0.0  ;;  %v328_v54 = vsel %vm318_vm1, %v403_v50, %v327_v47 }
  0xcb   :  { %v329_v55 = vmax.f32 %v328_v54, 0.0  ;;  %v341_v56 = vsel %vm331_vm2, %v404_v52, %v340_v40 }
  0xcc   :  { %v317_v57 = vmin.f32 %v316_v53, 1.0  ;;  %v342_v58 = vmax.f32 %v341_v56, 0.0 }
  0xcd   :  { %v330_v59 = vmin.f32 %v329_v55, 1.0 }
  0xce   :  { %344 = vst [vmem:[#allocation11] sm:$0xff] %v317_v57  ;;  %v343_v60 = vmin.f32 %v342_v58, 1.0 }
  0xcf   :  { %345 = vst [vmem:[#allocation11 + $0x8] sm:$0xff] %v330_v59 }
  0xd0   :  { %346 = vst [vmem:[#allocation11 + $0x10] sm:$0xff] %v343_v60 }
  0xd1   :  { %585 = shalt.err (!%p582_p1)
}
  0xd2   :  { %382 = dma.vmem_to_hbm [thread:$0]  %s377_s16, 384, %s747_s5, [#allocation10], %s603_s21, %s603_s21, %s604_s22  }
  0xd3   :  { %598 = dma.done.wait [#allocation4], 384  }
  0xd4   :  { %599 = vsyncadd [#allocation4], 4294966912 }
  0xd5   :  { %600 = dma.done.wait [#allocation10], 768  }
  0xd6   :  { %601 = vsyncadd [#allocation10], 4294966528 }
  0xd7   :  { %392 = vsyncpa [#allocation3], 1 }
  0xd8   :  { %393 = vsyncpa [#allocation6], 1 }
  0xd9   :  { %394 = vsyncpa [#allocation4], 1 }
  0xda   :  { %395 = vsyncpa [#allocation10], 1 }

</bundles_post_ra>
